<compile_context>
chip_gen: v6e
topology: v6e:2x2x1
jax: 0.10.0
libtpu: 0.0.40
codegen_flags: <defaults>
</compile_context>

<pallas_src>
import functools
import math
import numpy as np

import jax
import jax.numpy as jnp
from jax.experimental import pallas as pl
from jax.experimental.pallas import tpu as pltpu


# ----------------------------------------------------------------------------
# hardware-aware sizing
# ----------------------------------------------------------------------------
def _vmem_capacity_bytes():
    """Physical VMEM per TensorCore; hardware probe only (never masks kernel
    build/run errors).  Falls back to the v7x minimum (64 MiB)."""
    get_info = getattr(pltpu, "get_tpu_info", None)
    if get_info is None:
        return 64 * 1024 * 1024
    try:
        return int(get_info().vmem_capacity_bytes)
    except Exception:  # probe failure only -> conservative default
        return 64 * 1024 * 1024


def _pick_col_tile(Nx, target):
    """Largest divisor of Nx that is <= target, preferring x128 then x8."""
    if Nx <= target:
        return Nx
    for step in (128, 8):
        start = (target // step) * step
        for t in range(start, 0, -step):
            if t > 0 and Nx % t == 0:
                return t
    return Nx


# ----------------------------------------------------------------------------
# host-side operator construction (numpy)
# ----------------------------------------------------------------------------
def _build_operators(Hh, Ww, feature_size, wavelength, z):
    """Float32 numpy operators mirroring propagation_ASM(..., linear_conv=True):
      - band-limited ASM transfer function H (ifftshifted), re/im
      - ortho DFT matrices folded with ifftshift AND the linear-conv zero
        padding of the input (forward transform)
      - ortho inverse-DFT folded with fftshift + center crop (backward)
      - Karatsuba "sum" (re+im) matrices for the constant complex operators."""
    Ny, Nx = 2 * Hh, 2 * Ww
    dy, dx = feature_size
    y_len, x_len = dy * float(Ny), dx * float(Nx)

    fy = np.linspace(-1 / (2 * dy) + 0.5 / (2 * y_len),
                     1 / (2 * dy) - 0.5 / (2 * y_len), Ny)
    fx = np.linspace(-1 / (2 * dx) + 0.5 / (2 * x_len),
                     1 / (2 * dx) - 0.5 / (2 * x_len), Nx)
    FX, FY = np.meshgrid(fx, fy)                                   # (Ny, Nx)
    HH = 2 * math.pi * np.sqrt(1 / wavelength ** 2 - (FX ** 2 + FY ** 2))
    H_exp = HH * float(z)

    # band-limited ASM (Matsushima & Shimobaba 2009)
    fy_max = 1 / np.sqrt((2 * z * (1 / y_len)) ** 2 + 1) / wavelength
    fx_max = 1 / np.sqrt((2 * z * (1 / x_len)) ** 2 + 1) / wavelength
    H_filt = ((np.abs(FX) < fx_max) & (np.abs(FY) < fy_max)).astype(np.float64)

    H_re = np.fft.ifftshift(H_filt * np.cos(H_exp))
    H_im = np.fft.ifftshift(H_filt * np.sin(H_exp))

    def fwd_op(N):
        # M @ v == fft(ifftshift(v), norm='ortho')
        return np.fft.fft(np.fft.ifftshift(np.eye(N), axes=0), axis=0,
                          norm='ortho')

    def inv_crop_op(N, out):
        # rows of (fftshift o ifft_ortho), center-cropped to `out` rows
        M = np.fft.fftshift(np.fft.ifft(np.eye(N), axis=0, norm='ortho'),
                            axes=0)
        front = (N - out + (N % 2)) // 2
        return M[front:front + out, :]

    # zero padding of the input field folded directly into the forward ops
    pfh = (Hh + Hh % 2) // 2
    pfw = (Ww + Ww % 2) // 2
    Ayc = fwd_op(Ny)[:, pfh:pfh + Hh]            # (Ny, Hh)
    Bxtc = fwd_op(Nx).T[pfw:pfw + Ww, :]         # (Ww, Nx)
    Gy = inv_crop_op(Ny, Hh)                     # (Hh, Ny)
    Gxt = inv_crop_op(Nx, Ww).T                  # (Nx, Ww)

    ops = dict(
        ayc_re=Ayc.real, ayc_im=Ayc.imag,
        bxtc_re=Bxtc.real, bxtc_im=Bxtc.imag, bxtc_sum=Bxtc.real + Bxtc.imag,
        h_re=H_re, h_im=H_im,
        gy_re=Gy.real, gy_im=Gy.imag, gy_sum=Gy.real + Gy.imag,
        gxt_re=Gxt.real, gxt_im=Gxt.imag, gxt_sum=Gxt.real + Gxt.imag,
    )
    return {k: np.asarray(v, dtype=np.float32) for k, v in ops.items()}


@functools.lru_cache(maxsize=8)
def _get_ops(Hh, Ww, feature_size, wavelength, z, col_target):
    """Build operators and pre-block the streamed ones so each Nx-tile is a
    contiguous HBM block (full-efficiency DMA).  MXU operands in bf16, H in
    f32 (it never touches the MXU)."""
    raw = _build_operators(Hh, Ww, feature_size, wavelength, z)
    Nx = 2 * Ww
    tn = _pick_col_tile(Nx, col_target)
    Nj = Nx // tn

    def blk_cols(a):      # (R, Nx) -> (Nj, R, tn), contiguous column tiles
        R = a.shape[0]
        return np.ascontiguousarray(a.reshape(R, Nj, tn).transpose(1, 0, 2))

    def blk_rows(a):      # (Nx, C) -> (Nj, tn, C), contiguous row tiles
        return np.ascontiguousarray(a.reshape(Nj, tn, a.shape[1]))

    bf16 = jnp.bfloat16
    return dict(
        ayc_re=jnp.asarray(raw["ayc_re"], bf16),
        ayc_im=jnp.asarray(raw["ayc_im"], bf16),
        bxtc_re=jnp.asarray(blk_cols(raw["bxtc_re"]), bf16),
        bxtc_im=jnp.asarray(blk_cols(raw["bxtc_im"]), bf16),
        bxtc_sum=jnp.asarray(blk_cols(raw["bxtc_sum"]), bf16),
        h_re=jnp.asarray(blk_cols(raw["h_re"]), jnp.float32),
        h_im=jnp.asarray(blk_cols(raw["h_im"]), jnp.float32),
        gy_re=jnp.asarray(raw["gy_re"], bf16),
        gy_im=jnp.asarray(raw["gy_im"], bf16),
        gy_sum=jnp.asarray(raw["gy_sum"], bf16),
        gxt_re=jnp.asarray(blk_rows(raw["gxt_re"]), bf16),
        gxt_im=jnp.asarray(blk_rows(raw["gxt_im"]), bf16),
        gxt_sum=jnp.asarray(blk_rows(raw["gxt_sum"]), bf16),
    )


# ----------------------------------------------------------------------------
# Pallas kernels
# ----------------------------------------------------------------------------
def _asm_prop_kernel(x_ref,
                     ayc_re_ref, ayc_im_ref,
                     bxtc_re_ref, bxtc_im_ref, bxtc_sum_ref,
                     h_re_ref, h_im_ref,
                     gy_re_ref, gy_im_ref, gy_sum_ref,
                     gxt_re_ref, gxt_im_ref, gxt_sum_ref,
                     o_re_ref, o_im_ref, max2_ref,
                     t_re_s, t_im_s):
    """Tiled ASM propagation.  Grid = (batch, Nx-tile); the Nx-tile axis is a
    reduction into the per-batch (Hh, Ww) output blocks.  bf16 MXU matmuls
    (Karatsuba complex form), f32 accumulation, f32 transfer function."""
    j = pl.program_id(1)
    dot = lambda a, c: jnp.dot(a, c, preferred_element_type=jnp.float32)
    bf = lambda v: v.astype(jnp.bfloat16)

    @pl.when(j == 0)
    def _init():
        # Row transform (padding folded into Ayc): t = Ayc @ x,  x is real.
        x = x_ref[0]                                   # (Hh, Ww) bf16
        t_re_s[...] = bf(dot(ayc_re_ref[...], x))      # (Ny, Ww)
        t_im_s[...] = bf(dot(ayc_im_ref[...], x))
        o_re_ref[...] = jnp.zeros_like(o_re_ref)
        o_im_ref[...] = jnp.zeros_like(o_im_ref)

    t_re = t_re_s[...]
    t_im = t_im_s[...]

    # U1[:, tile] = t @ Bxtc[:, tile]   (complex, Karatsuba: 3 MXU passes)
    d1 = dot(t_re, bxtc_re_ref[0])                     # (Ny, tn) f32
    d2 = dot(t_im, bxtc_im_ref[0])
    d3 = dot(t_re + t_im, bxtc_sum_ref[0])
    u1_re = d1 - d2
    u1_im = d3 - d1 - d2

    # U2 = H * U1  (band-limited ASM transfer function, f32 elementwise)
    h_re = h_re_ref[0]
    h_im = h_im_ref[0]
    u2_re = h_re * u1_re - h_im * u1_im
    u2_im = h_re * u1_im + h_im * u1_re

    # s[:, tile] = Gy @ U2[:, tile]   (inverse row transform + crop)
    e1 = dot(gy_re_ref[...], bf(u2_re))                # (Hh, tn) f32
    e2 = dot(gy_im_ref[...], bf(u2_im))
    e3 = dot(gy_sum_ref[...], bf(u2_re + u2_im))
    s_re = e1 - e2
    s_im = e3 - e1 - e2

    # o += s[:, tile] @ Gxt[tile, :]  (inverse col transform + crop; reduction
    # over Nx tiles accumulated directly in the per-batch output blocks)
    f1 = dot(bf(s_re), gxt_re_ref[0])                  # (Hh, Ww) f32
    f2 = dot(bf(s_im), gxt_im_ref[0])
    f3 = dot(bf(s_re + s_im), gxt_sum_ref[0])
    o_re_ref[0] += f1 - f2
    o_im_ref[0] += f3 - f1 - f2

    @pl.when(j == pl.num_programs(1) - 1)
    def _fin():
        o_re = o_re_ref[0]
        o_im = o_im_ref[0]
        m2 = o_re * o_re + o_im * o_im                 # sqrt taken in glue
        max2_ref[0] = jnp.max(jnp.max(m2, axis=1, keepdims=True),
                              axis=0, keepdims=True)


def _dp_apply_kernel(mean_ref, ang_ref, acs_ref, out_ref, *, row_tile):
    """double_phase: checkerboard merge of (ang - acos) / (ang + acos),
    subtract the global mean, wrap into [-pi, pi) (torch floor-mod,
    three_pi=False)."""
    r = pl.program_id(1)
    ang = ang_ref[0]                                   # (row_tile, Ww)
    acs = acs_ref[0]
    rows = jax.lax.broadcasted_iota(jnp.int32, ang.shape, 0) + r * row_tile
    cols = jax.lax.broadcasted_iota(jnp.int32, ang.shape, 1)
    use_b = jnp.bitwise_and(rows + cols, 1) == 1       # (even,odd) & (odd,even)
    p = jnp.where(use_b, ang + acs, ang - acs) - mean_ref[...]
    mp = jnp.float32(2.0 * math.pi)                    # three_pi=False
    shifted = p + mp * 0.5
    out_ref[0] = shifted - jnp.floor(shifted * jnp.float32(1.0 / (2.0 * math.pi))) * mp - mp * 0.5


# ----------------------------------------------------------------------------
# pallas_call wrappers
# ----------------------------------------------------------------------------
def _prop_pallas(x_bf, ops, vmem_limit):
    B, Hh, Ww = x_bf.shape
    Ny = ops["ayc_re"].shape[0]
    Nj, _, tn = ops["bxtc_re"].shape

    const2 = lambda shape: pl.BlockSpec(shape, lambda b, j: (0, 0))
    stream = lambda shape: pl.BlockSpec(shape, lambda b, j: (j, 0, 0))

    in_specs = [
        pl.BlockSpec((1, Hh, Ww), lambda b, j: (b, 0, 0)),            # x
        const2((Ny, Hh)), const2((Ny, Hh)),                           # Ayc
        stream((1, Ww, tn)), stream((1, Ww, tn)), stream((1, Ww, tn)),  # Bxtc
        stream((1, Ny, tn)), stream((1, Ny, tn)),                     # H (f32)
        const2((Hh, Ny)), const2((Hh, Ny)), const2((Hh, Ny)),         # Gy
        stream((1, tn, Ww)), stream((1, tn, Ww)), stream((1, tn, Ww)),  # Gxt
    ]
    out_specs = [
        pl.BlockSpec((1, Hh, Ww), lambda b, j: (b, 0, 0)),
        pl.BlockSpec((1, Hh, Ww), lambda b, j: (b, 0, 0)),
        pl.BlockSpec((1, 1, 1), lambda b, j: (b, 0, 0)),
    ]
    out_shape = [
        jax.ShapeDtypeStruct((B, Hh, Ww), jnp.float32),
        jax.ShapeDtypeStruct((B, Hh, Ww), jnp.float32),
        jax.ShapeDtypeStruct((B, 1, 1), jnp.float32),
    ]
    return pl.pallas_call(
        _asm_prop_kernel,
        grid=(B, Nj),
        in_specs=in_specs,
        out_specs=out_specs,
        out_shape=out_shape,
        scratch_shapes=[pltpu.VMEM((Ny, Ww), jnp.bfloat16),
                        pltpu.VMEM((Ny, Ww), jnp.bfloat16)],
        compiler_params=pltpu.CompilerParams(
            dimension_semantics=("parallel", "arbitrary"),
            vmem_limit_bytes=vmem_limit),
    )(x_bf,
      ops["ayc_re"], ops["ayc_im"],
      ops["bxtc_re"], ops["bxtc_im"], ops["bxtc_sum"],
      ops["h_re"], ops["h_im"],
      ops["gy_re"], ops["gy_im"], ops["gy_sum"],
      ops["gxt_re"], ops["gxt_im"], ops["gxt_sum"])


def _dp_apply_pallas(mean, ang, acs, row_tile, vmem_limit):
    B, Hp, Ww = ang.shape
    nrt = Hp // row_tile
    tile_spec = pl.BlockSpec((1, row_tile, Ww), lambda b, r: (b, r, 0))
    return pl.pallas_call(
        functools.partial(_dp_apply_kernel, row_tile=row_tile),
        grid=(B, nrt),
        in_specs=[pl.BlockSpec((1, 1), lambda b, r: (0, 0)),
                  tile_spec, tile_spec],
        out_specs=tile_spec,
        out_shape=jax.ShapeDtypeStruct((B, Hp, Ww), jnp.float32),
        compiler_params=pltpu.CompilerParams(
            dimension_semantics=("parallel", "parallel"),
            vmem_limit_bytes=vmem_limit),
    )(mean, ang, acs)


# ----------------------------------------------------------------------------
# full forward (single jit)
# ----------------------------------------------------------------------------
@functools.partial(jax.jit, static_argnames=("row_cap", "vmem_limit"))
def _holonet_impl(x_bf, ops, *, row_cap, vmem_limit):
    B, Hh, Ww = x_bf.shape

    o_re, o_im, max2 = _prop_pallas(x_bf, ops, vmem_limit)

    # rect_to_polar + arccos + global checkerboard mean, fused XLA glue.
    # TODO(synk): arctan2 / arccos stay in XLA (Mosaic transcendental lowering
    # for them is not guaranteed); all matmul / heavy elementwise paths are in
    # the Pallas kernels.
    maxv = jnp.sqrt(jnp.max(max2))                      # global max amplitude
    amp = jnp.sqrt(o_re * o_re + o_im * o_im)
    ang = jnp.arctan2(o_im, o_re)
    acs = jnp.arccos(jnp.clip(amp / maxv, 0.0, 1.0))    # clip guards rounding

    rows = jax.lax.broadcasted_iota(jnp.int32, (Hh, Ww), 0)
    cols = jax.lax.broadcasted_iota(jnp.int32, (Hh, Ww), 1)
    sign = jnp.where(((rows + cols) & 1) == 1,
                     jnp.float32(1.0), jnp.float32(-1.0))
    total = jnp.sum(ang) + jnp.sum(acs * sign[None, :, :])
    mean = (total / jnp.float32(B * Hh * Ww)).reshape(1, 1)

    # double-phase merge / mean-subtract / wrap (tiled, fully parallel grid).
    row_tile = min(max(8, (row_cap // 8) * 8), ((Hh + 7) // 8) * 8)
    Hp = pl.cdiv(Hh, row_tile) * row_tile
    if Hp != Hh:   # pad rows instead of relying on boundary-block masking
        pad = Hp - Hh
        ang_p = jnp.pad(ang, ((0, 0), (0, pad), (0, 0)))
        acs_p = jnp.pad(acs, ((0, 0), (0, pad), (0, 0)))
    else:
        ang_p, acs_p = ang, acs
    phase = _dp_apply_pallas(mean, ang_p, acs_p, row_tile, vmem_limit)[:, :Hh]

    return amp[:, None, :, :], phase[:, None, :, :]


def holonet_forward(target_amp, distance=0.1, wavelength=5.2e-7,
                    feature_size=6.4e-6):
    """JAX/Pallas equivalent of HoloNet.forward with default constructor args.
    target_amp: [B, 1, H, W] float32.  Returns (slm_amp, slm_phase), both
    [B, 1, H, W] float32."""
    if not hasattr(feature_size, "__len__"):
        feature_size = (feature_size, feature_size)
    feature_size = (float(feature_size[0]), float(feature_size[1]))
    z = -float(distance)                               # HoloNet negates distance

    B, C, Hh, Ww = target_amp.shape
    assert C == 1
    x = target_amp[:, 0].astype(jnp.bfloat16)          # [B, H, W] MXU input

    # generation-aware sizing: v7x (64 MiB VMEM/TC) -> small tiles, <=48 MiB
    # limit; v5e/v6e (128 MiB) -> larger tiles, ~96 MiB limit.
    vmem_cap = _vmem_capacity_bytes()
    vmem_limit = min(vmem_cap * 3 // 4, 100 * 1024 * 1024)
    big_vmem = vmem_cap > 80 * 1024 * 1024
    col_target = 512 if big_vmem else 256
    row_cap = 512 if big_vmem else 256

    ops = _get_ops(Hh, Ww, feature_size, float(wavelength), z, col_target)
    return _holonet_impl(x, ops, row_cap=row_cap, vmem_limit=vmem_limit)


if __name__ == "__main__":
    key = jax.random.PRNGKey(0)
    # Spatial size 32 keeps the Matsushima band-limit filter non-empty at the
    # default distance / pixel pitch (16 would zero out the transfer function).
    B, C, Hh, Ww = 2, 1, 32, 32
    target_amp = jax.random.uniform(key, (B, C, Hh, Ww), dtype=jnp.float32)

    slm_amp, slm_phase = holonet_forward(target_amp)
    jax.block_until_ready((slm_amp, slm_phase))

    assert slm_amp.shape == (B, C, Hh, Ww)
    assert slm_phase.shape == (B, C, Hh, Ww)
    assert bool(jnp.isfinite(slm_amp).all()) and bool(jnp.isfinite(slm_phase).all())
    print("KERNEL_OK")
</pallas_src>

<mosaic_0001>
module attributes {stable_mosaic.version = 11 : i64} {
  func.func @_asm_prop_kernel(%arg0: i32, %arg1: i32, %arg2: memref<1x32x32xbf16, #tpu.memory_space<vmem>>, %arg3: memref<64x32xbf16, #tpu.memory_space<vmem>>, %arg4: memref<64x32xbf16, #tpu.memory_space<vmem>>, %arg5: memref<1x32x64xbf16, #tpu.memory_space<vmem>>, %arg6: memref<1x32x64xbf16, #tpu.memory_space<vmem>>, %arg7: memref<1x32x64xbf16, #tpu.memory_space<vmem>>, %arg8: memref<1x64x64xf32, #tpu.memory_space<vmem>>, %arg9: memref<1x64x64xf32, #tpu.memory_space<vmem>>, %arg10: memref<32x64xbf16, #tpu.memory_space<vmem>>, %arg11: memref<32x64xbf16, #tpu.memory_space<vmem>>, %arg12: memref<32x64xbf16, #tpu.memory_space<vmem>>, %arg13: memref<1x64x32xbf16, #tpu.memory_space<vmem>>, %arg14: memref<1x64x32xbf16, #tpu.memory_space<vmem>>, %arg15: memref<1x64x32xbf16, #tpu.memory_space<vmem>>, %arg16: memref<1x32x32xf32, #tpu.memory_space<vmem>>, %arg17: memref<1x32x32xf32, #tpu.memory_space<vmem>>, %arg18: memref<1x1x1xf32, #tpu.memory_space<vmem>>, %arg19: memref<64x32xbf16, #tpu.memory_space<vmem>>, %arg20: memref<64x32xbf16, #tpu.memory_space<vmem>>) attributes {dimension_semantics = [#tpu.dimension_semantics<parallel>, #tpu.dimension_semantics<arbitrary>], iteration_bounds = array<i64: 2, 1>, scalar_prefetch = 0 : i64, scratch_operands = 2 : i64, tpu.core_type = #tpu.core_type<tc>, window_params = [{transform_indices = @transform_0, window_bounds = array<i64: 1, 32, 32>}, {pipeline_mode = #tpu.pipeline_mode<synchronous>, transform_indices = @transform_1, window_bounds = array<i64: 64, 32>}, {pipeline_mode = #tpu.pipeline_mode<synchronous>, transform_indices = @transform_2, window_bounds = array<i64: 64, 32>}, {transform_indices = @transform_3, window_bounds = array<i64: 1, 32, 64>}, {transform_indices = @transform_4, window_bounds = array<i64: 1, 32, 64>}, {transform_indices = @transform_5, window_bounds = array<i64: 1, 32, 64>}, {transform_indices = @transform_6, window_bounds = array<i64: 1, 64, 64>}, {transform_indices = @transform_7, window_bounds = array<i64: 1, 64, 64>}, {pipeline_mode = #tpu.pipeline_mode<synchronous>, transform_indices = @transform_8, window_bounds = array<i64: 32, 64>}, {pipeline_mode = #tpu.pipeline_mode<synchronous>, transform_indices = @transform_9, window_bounds = array<i64: 32, 64>}, {pipeline_mode = #tpu.pipeline_mode<synchronous>, transform_indices = @transform_10, window_bounds = array<i64: 32, 64>}, {transform_indices = @transform_11, window_bounds = array<i64: 1, 64, 32>}, {transform_indices = @transform_12, window_bounds = array<i64: 1, 64, 32>}, {transform_indices = @transform_13, window_bounds = array<i64: 1, 64, 32>}, {transform_indices = @transform_14, window_bounds = array<i64: 1, 32, 32>}, {transform_indices = @transform_15, window_bounds = array<i64: 1, 32, 32>}, {transform_indices = @transform_16, window_bounds = array<i64: 1, 1, 1>}]} {
    %c0_i32 = arith.constant 0 : i32
    %0 = arith.cmpi eq, %arg1, %c0_i32 : i32
    %1 = arith.extui %0 : i1 to i32
    %c0_i32_0 = arith.constant 0 : i32
    %2 = arith.cmpi ne, %1, %c0_i32_0 : i32
    scf.if %2 {
      %c0_56 = arith.constant 0 : index
      %c0_57 = arith.constant 0 : index
      %c0_58 = arith.constant 0 : index
      %72 = vector.load %arg2[%c0_56, %c0_57, %c0_58] : memref<1x32x32xbf16, #tpu.memory_space<vmem>>, vector<1x32x32xbf16>
      %73 = vector.shape_cast %72 : vector<1x32x32xbf16> to vector<32x32xbf16>
      %c0_59 = arith.constant 0 : index
      %c0_60 = arith.constant 0 : index
      %74 = vector.load %arg3[%c0_59, %c0_60] : memref<64x32xbf16, #tpu.memory_space<vmem>>, vector<64x32xbf16>
      %cst_61 = arith.constant dense<0.000000e+00> : vector<64x32xf32>
      %75 = tpu.matmul %74, %73, %cst_61 {dimension_numbers = #tpu.dot_dimension_numbers<[1], [0], [0], [1], [0, 0, 1, 1], [], []>} : vector<64x32xbf16>, vector<32x32xbf16>, vector<64x32xf32> -> vector<64x32xf32>
      %76 = arith.truncf %75 : vector<64x32xf32> to vector<64x32xbf16>
      %c0_62 = arith.constant 0 : index
      %c0_63 = arith.constant 0 : index
      %77 = vector.load %arg19[%c0_62, %c0_63] : memref<64x32xbf16, #tpu.memory_space<vmem>>, vector<64x32xbf16>
      tpu.vector_store %arg19[%c0_62, %c0_63], %76 {strides = array<i32>} : memref<64x32xbf16, #tpu.memory_space<vmem>>, vector<64x32xbf16>,
      %c0_64 = arith.constant 0 : index
      %c0_65 = arith.constant 0 : index
      %78 = vector.load %arg4[%c0_64, %c0_65] : memref<64x32xbf16, #tpu.memory_space<vmem>>, vector<64x32xbf16>
      %cst_66 = arith.constant dense<0.000000e+00> : vector<64x32xf32>
      %79 = tpu.matmul %78, %73, %cst_66 {dimension_numbers = #tpu.dot_dimension_numbers<[1], [0], [0], [1], [0, 0, 1, 1], [], []>} : vector<64x32xbf16>, vector<32x32xbf16>, vector<64x32xf32> -> vector<64x32xf32>
      %80 = arith.truncf %79 : vector<64x32xf32> to vector<64x32xbf16>
      %c0_67 = arith.constant 0 : index
      %c0_68 = arith.constant 0 : index
      %81 = vector.load %arg20[%c0_67, %c0_68] : memref<64x32xbf16, #tpu.memory_space<vmem>>, vector<64x32xbf16>
      tpu.vector_store %arg20[%c0_67, %c0_68], %80 {strides = array<i32>} : memref<64x32xbf16, #tpu.memory_space<vmem>>, vector<64x32xbf16>,
      %cst_69 = arith.constant 0.000000e+00 : f32
      %82 = vector.broadcast %cst_69 : f32 to vector<1x32x32xf32>
      %c0_70 = arith.constant 0 : index
      %c0_71 = arith.constant 0 : index
      %c0_72 = arith.constant 0 : index
      %83 = vector.load %arg16[%c0_70, %c0_71, %c0_72] : memref<1x32x32xf32, #tpu.memory_space<vmem>>, vector<1x32x32xf32>
      tpu.vector_store %arg16[%c0_70, %c0_71, %c0_72], %82 {strides = array<i32>} : memref<1x32x32xf32, #tpu.memory_space<vmem>>, vector<1x32x32xf32>,
      %cst_73 = arith.constant 0.000000e+00 : f32
      %84 = vector.broadcast %cst_73 : f32 to vector<1x32x32xf32>
      %c0_74 = arith.constant 0 : index
      %c0_75 = arith.constant 0 : index
      %c0_76 = arith.constant 0 : index
      %85 = vector.load %arg17[%c0_74, %c0_75, %c0_76] : memref<1x32x32xf32, #tpu.memory_space<vmem>>, vector<1x32x32xf32>
      tpu.vector_store %arg17[%c0_74, %c0_75, %c0_76], %84 {strides = array<i32>} : memref<1x32x32xf32, #tpu.memory_space<vmem>>, vector<1x32x32xf32>,
    } else {
    }
    %c0 = arith.constant 0 : index
    %c0_1 = arith.constant 0 : index
    %3 = vector.load %arg19[%c0, %c0_1] : memref<64x32xbf16, #tpu.memory_space<vmem>>, vector<64x32xbf16>
    %c0_2 = arith.constant 0 : index
    %c0_3 = arith.constant 0 : index
    %4 = vector.load %arg20[%c0_2, %c0_3] : memref<64x32xbf16, #tpu.memory_space<vmem>>, vector<64x32xbf16>
    %c0_4 = arith.constant 0 : index
    %c0_5 = arith.constant 0 : index
    %c0_6 = arith.constant 0 : index
    %5 = vector.load %arg5[%c0_4, %c0_5, %c0_6] : memref<1x32x64xbf16, #tpu.memory_space<vmem>>, vector<1x32x64xbf16>
    %6 = vector.shape_cast %5 : vector<1x32x64xbf16> to vector<32x64xbf16>
    %cst = arith.constant dense<0.000000e+00> : vector<64x64xf32>
    %7 = tpu.matmul %3, %6, %cst {dimension_numbers = #tpu.dot_dimension_numbers<[1], [0], [0], [1], [0, 0, 1, 1], [], []>} : vector<64x32xbf16>, vector<32x64xbf16>, vector<64x64xf32> -> vector<64x64xf32>
    %c0_7 = arith.constant 0 : index
    %c0_8 = arith.constant 0 : index
    %c0_9 = arith.constant 0 : index
    %8 = vector.load %arg6[%c0_7, %c0_8, %c0_9] : memref<1x32x64xbf16, #tpu.memory_space<vmem>>, vector<1x32x64xbf16>
    %9 = vector.shape_cast %8 : vector<1x32x64xbf16> to vector<32x64xbf16>
    %cst_10 = arith.constant dense<0.000000e+00> : vector<64x64xf32>
    %10 = tpu.matmul %4, %9, %cst_10 {dimension_numbers = #tpu.dot_dimension_numbers<[1], [0], [0], [1], [0, 0, 1, 1], [], []>} : vector<64x32xbf16>, vector<32x64xbf16>, vector<64x64xf32> -> vector<64x64xf32>
    %11 = arith.addf %3, %4 : vector<64x32xbf16>
    %c0_11 = arith.constant 0 : index
    %c0_12 = arith.constant 0 : index
    %c0_13 = arith.constant 0 : index
    %12 = vector.load %arg7[%c0_11, %c0_12, %c0_13] : memref<1x32x64xbf16, #tpu.memory_space<vmem>>, vector<1x32x64xbf16>
    %13 = vector.shape_cast %12 : vector<1x32x64xbf16> to vector<32x64xbf16>
    %cst_14 = arith.constant dense<0.000000e+00> : vector<64x64xf32>
    %14 = tpu.matmul %11, %13, %cst_14 {dimension_numbers = #tpu.dot_dimension_numbers<[1], [0], [0], [1], [0, 0, 1, 1], [], []>} : vector<64x32xbf16>, vector<32x64xbf16>, vector<64x64xf32> -> vector<64x64xf32>
    %15 = arith.subf %7, %10 : vector<64x64xf32>
    %16 = arith.subf %14, %7 : vector<64x64xf32>
    %17 = arith.subf %16, %10 : vector<64x64xf32>
    %c0_15 = arith.constant 0 : index
    %c0_16 = arith.constant 0 : index
    %c0_17 = arith.constant 0 : index
    %18 = vector.load %arg8[%c0_15, %c0_16, %c0_17] : memref<1x64x64xf32, #tpu.memory_space<vmem>>, vector<1x64x64xf32>
    %19 = vector.shape_cast %18 : vector<1x64x64xf32> to vector<64x64xf32>
    %c0_18 = arith.constant 0 : index
    %c0_19 = arith.constant 0 : index
    %c0_20 = arith.constant 0 : index
    %20 = vector.load %arg9[%c0_18, %c0_19, %c0_20] : memref<1x64x64xf32, #tpu.memory_space<vmem>>, vector<1x64x64xf32>
    %21 = vector.shape_cast %20 : vector<1x64x64xf32> to vector<64x64xf32>
    %22 = arith.mulf %19, %15 : vector<64x64xf32>
    %23 = arith.mulf %21, %17 : vector<64x64xf32>
    %24 = arith.subf %22, %23 : vector<64x64xf32>
    %25 = arith.mulf %19, %17 : vector<64x64xf32>
    %26 = arith.mulf %21, %15 : vector<64x64xf32>
    %27 = arith.addf %25, %26 : vector<64x64xf32>
    %c0_21 = arith.constant 0 : index
    %c0_22 = arith.constant 0 : index
    %28 = vector.load %arg10[%c0_21, %c0_22] : memref<32x64xbf16, #tpu.memory_space<vmem>>, vector<32x64xbf16>
    %29 = arith.truncf %24 : vector<64x64xf32> to vector<64x64xbf16>
    %cst_23 = arith.constant dense<0.000000e+00> : vector<32x64xf32>
    %30 = tpu.matmul %28, %29, %cst_23 {dimension_numbers = #tpu.dot_dimension_numbers<[1], [0], [0], [1], [0, 0, 1, 1], [], []>} : vector<32x64xbf16>, vector<64x64xbf16>, vector<32x64xf32> -> vector<32x64xf32>
    %c0_24 = arith.constant 0 : index
    %c0_25 = arith.constant 0 : index
    %31 = vector.load %arg11[%c0_24, %c0_25] : memref<32x64xbf16, #tpu.memory_space<vmem>>, vector<32x64xbf16>
    %32 = arith.truncf %27 : vector<64x64xf32> to vector<64x64xbf16>
    %cst_26 = arith.constant dense<0.000000e+00> : vector<32x64xf32>
    %33 = tpu.matmul %31, %32, %cst_26 {dimension_numbers = #tpu.dot_dimension_numbers<[1], [0], [0], [1], [0, 0, 1, 1], [], []>} : vector<32x64xbf16>, vector<64x64xbf16>, vector<32x64xf32> -> vector<32x64xf32>
    %c0_27 = arith.constant 0 : index
    %c0_28 = arith.constant 0 : index
    %34 = vector.load %arg12[%c0_27, %c0_28] : memref<32x64xbf16, #tpu.memory_space<vmem>>, vector<32x64xbf16>
    %35 = arith.addf %24, %27 : vector<64x64xf32>
    %36 = arith.truncf %35 : vector<64x64xf32> to vector<64x64xbf16>
    %cst_29 = arith.constant dense<0.000000e+00> : vector<32x64xf32>
    %37 = tpu.matmul %34, %36, %cst_29 {dimension_numbers = #tpu.dot_dimension_numbers<[1], [0], [0], [1], [0, 0, 1, 1], [], []>} : vector<32x64xbf16>, vector<64x64xbf16>, vector<32x64xf32> -> vector<32x64xf32>
    %38 = arith.subf %30, %33 : vector<32x64xf32>
    %39 = arith.subf %37, %30 : vector<32x64xf32>
    %40 = arith.subf %39, %33 : vector<32x64xf32>
    %41 = arith.truncf %38 : vector<32x64xf32> to vector<32x64xbf16>
    %c0_30 = arith.constant 0 : index
    %c0_31 = arith.constant 0 : index
    %c0_32 = arith.constant 0 : index
    %42 = vector.load %arg13[%c0_30, %c0_31, %c0_32] : memref<1x64x32xbf16, #tpu.memory_space<vmem>>, vector<1x64x32xbf16>
    %43 = vector.shape_cast %42 : vector<1x64x32xbf16> to vector<64x32xbf16>
    %cst_33 = arith.constant dense<0.000000e+00> : vector<32x32xf32>
    %44 = tpu.matmul %41, %43, %cst_33 {dimension_numbers = #tpu.dot_dimension_numbers<[1], [0], [0], [1], [0, 0, 1, 1], [], []>} : vector<32x64xbf16>, vector<64x32xbf16>, vector<32x32xf32> -> vector<32x32xf32>
    %45 = arith.truncf %40 : vector<32x64xf32> to vector<32x64xbf16>
    %c0_34 = arith.constant 0 : index
    %c0_35 = arith.constant 0 : index
    %c0_36 = arith.constant 0 : index
    %46 = vector.load %arg14[%c0_34, %c0_35, %c0_36] : memref<1x64x32xbf16, #tpu.memory_space<vmem>>, vector<1x64x32xbf16>
    %47 = vector.shape_cast %46 : vector<1x64x32xbf16> to vector<64x32xbf16>
    %cst_37 = arith.constant dense<0.000000e+00> : vector<32x32xf32>
    %48 = tpu.matmul %45, %47, %cst_37 {dimension_numbers = #tpu.dot_dimension_numbers<[1], [0], [0], [1], [0, 0, 1, 1], [], []>} : vector<32x64xbf16>, vector<64x32xbf16>, vector<32x32xf32> -> vector<32x32xf32>
    %49 = arith.addf %38, %40 : vector<32x64xf32>
    %50 = arith.truncf %49 : vector<32x64xf32> to vector<32x64xbf16>
    %c0_38 = arith.constant 0 : index
    %c0_39 = arith.constant 0 : index
    %c0_40 = arith.constant 0 : index
    %51 = vector.load %arg15[%c0_38, %c0_39, %c0_40] : memref<1x64x32xbf16, #tpu.memory_space<vmem>>, vector<1x64x32xbf16>
    %52 = vector.shape_cast %51 : vector<1x64x32xbf16> to vector<64x32xbf16>
    %cst_41 = arith.constant dense<0.000000e+00> : vector<32x32xf32>
    %53 = tpu.matmul %50, %52, %cst_41 {dimension_numbers = #tpu.dot_dimension_numbers<[1], [0], [0], [1], [0, 0, 1, 1], [], []>} : vector<32x64xbf16>, vector<64x32xbf16>, vector<32x32xf32> -> vector<32x32xf32>
    %c0_42 = arith.constant 0 : index
    %c0_43 = arith.constant 0 : index
    %c0_44 = arith.constant 0 : index
    %54 = vector.load %arg16[%c0_42, %c0_43, %c0_44] : memref<1x32x32xf32, #tpu.memory_space<vmem>>, vector<1x32x32xf32>
    %55 = vector.shape_cast %54 : vector<1x32x32xf32> to vector<32x32xf32>
    %56 = arith.subf %44, %48 : vector<32x32xf32>
    %57 = arith.addf %55, %56 : vector<32x32xf32>
    %c0_45 = arith.constant 0 : index
    %c0_46 = arith.constant 0 : index
    %c0_47 = arith.constant 0 : index
    %58 = vector.load %arg16[%c0_45, %c0_46, %c0_47] : memref<1x32x32xf32, #tpu.memory_space<vmem>>, vector<1x32x32xf32>
    %59 = vector.shape_cast %58 : vector<1x32x32xf32> to vector<32x32xf32>
    %60 = vector.shape_cast %57 : vector<32x32xf32> to vector<1x32x32xf32>
    tpu.vector_store %arg16[%c0_45, %c0_46, %c0_47], %60 {strides = array<i32>} : memref<1x32x32xf32, #tpu.memory_space<vmem>>, vector<1x32x32xf32>,
    %c0_48 = arith.constant 0 : index
    %c0_49 = arith.constant 0 : index
    %c0_50 = arith.constant 0 : index
    %61 = vector.load %arg17[%c0_48, %c0_49, %c0_50] : memref<1x32x32xf32, #tpu.memory_space<vmem>>, vector<1x32x32xf32>
    %62 = vector.shape_cast %61 : vector<1x32x32xf32> to vector<32x32xf32>
    %63 = arith.subf %53, %44 : vector<32x32xf32>
    %64 = arith.subf %63, %48 : vector<32x32xf32>
    %65 = arith.addf %62, %64 : vector<32x32xf32>
    %c0_51 = arith.constant 0 : index
    %c0_52 = arith.constant 0 : index
    %c0_53 = arith.constant 0 : index
    %66 = vector.load %arg17[%c0_51, %c0_52, %c0_53] : memref<1x32x32xf32, #tpu.memory_space<vmem>>, vector<1x32x32xf32>
    %67 = vector.shape_cast %66 : vector<1x32x32xf32> to vector<32x32xf32>
    %68 = vector.shape_cast %65 : vector<32x32xf32> to vector<1x32x32xf32>
    tpu.vector_store %arg17[%c0_51, %c0_52, %c0_53], %68 {strides = array<i32>} : memref<1x32x32xf32, #tpu.memory_space<vmem>>, vector<1x32x32xf32>,
    %c0_i32_54 = arith.constant 0 : i32
    %69 = arith.cmpi eq, %arg1, %c0_i32_54 : i32
    %70 = arith.extui %69 : i1 to i32
    %c0_i32_55 = arith.constant 0 : i32
    %71 = arith.cmpi ne, %70, %c0_i32_55 : i32
    scf.if %71 {
      %c0_56 = arith.constant 0 : index
      %c0_57 = arith.constant 0 : index
      %c0_58 = arith.constant 0 : index
      %72 = vector.load %arg16[%c0_56, %c0_57, %c0_58] : memref<1x32x32xf32, #tpu.memory_space<vmem>>, vector<1x32x32xf32>
      %73 = vector.shape_cast %72 : vector<1x32x32xf32> to vector<32x32xf32>
      %c0_59 = arith.constant 0 : index
      %c0_60 = arith.constant 0 : index
      %c0_61 = arith.constant 0 : index
      %74 = vector.load %arg17[%c0_59, %c0_60, %c0_61] : memref<1x32x32xf32, #tpu.memory_space<vmem>>, vector<1x32x32xf32>
      %75 = vector.shape_cast %74 : vector<1x32x32xf32> to vector<32x32xf32>
      %76 = arith.mulf %73, %73 : vector<32x32xf32>
      %77 = arith.mulf %75, %75 : vector<32x32xf32>
      %78 = arith.addf %76, %77 : vector<32x32xf32>
      %cst_62 = arith.constant dense<0xFF800000> : vector<32xf32>
      %79 = vector.multi_reduction <maximumf>, %78, %cst_62 [1] : vector<32x32xf32> to vector<32xf32>
      %80 = vector.shape_cast %79 : vector<32xf32> to vector<32x1xf32>
      %cst_63 = arith.constant dense<0xFF800000> : vector<1xf32>
      %81 = vector.multi_reduction <maximumf>, %80, %cst_63 [0] : vector<32x1xf32> to vector<1xf32>
      %82 = vector.shape_cast %81 : vector<1xf32> to vector<1x1xf32>
      %c0_64 = arith.constant 0 : index
      %c0_65 = arith.constant 0 : index
      %c0_66 = arith.constant 0 : index
      %83 = vector.load %arg18[%c0_64, %c0_65, %c0_66] : memref<1x1x1xf32, #tpu.memory_space<vmem>>, vector<1x1x1xf32>
      %84 = vector.shape_cast %83 : vector<1x1x1xf32> to vector<1x1xf32>
      %85 = vector.shape_cast %82 : vector<1x1xf32> to vector<1x1x1xf32>
      tpu.vector_store %arg18[%c0_64, %c0_65, %c0_66], %85 {strides = array<i32>} : memref<1x1x1xf32, #tpu.memory_space<vmem>>, vector<1x1x1xf32>,
    } else {
    }
    return
  }
  func.func @transform_0(%arg0: i32, %arg1: i32) -> (i32, i32, i32) {
    %c0_i32 = arith.constant 0 : i32
    %c0_i32_0 = arith.constant 0 : i32
    %c0_i32_1 = arith.constant 0 : i32
    return %arg0, %c0_i32, %c0_i32_0 : i32, i32, i32
  }
  func.func @transform_1(%arg0: i32, %arg1: i32) -> (i32, i32) {
    %c0_i32 = arith.constant 0 : i32
    %c0_i32_0 = arith.constant 0 : i32
    %c0_i32_1 = arith.constant 0 : i32
    return %c0_i32, %c0_i32_0 : i32, i32
  }
  func.func @transform_2(%arg0: i32, %arg1: i32) -> (i32, i32) {
    %c0_i32 = arith.constant 0 : i32
    %c0_i32_0 = arith.constant 0 : i32
    %c0_i32_1 = arith.constant 0 : i32
    return %c0_i32, %c0_i32_0 : i32, i32
  }
  func.func @transform_3(%arg0: i32, %arg1: i32) -> (i32, i32, i32) {
    %c0_i32 = arith.constant 0 : i32
    %c0_i32_0 = arith.constant 0 : i32
    %c0_i32_1 = arith.constant 0 : i32
    return %arg1, %c0_i32, %c0_i32_0 : i32, i32, i32
  }
  func.func @transform_4(%arg0: i32, %arg1: i32) -> (i32, i32, i32) {
    %c0_i32 = arith.constant 0 : i32
    %c0_i32_0 = arith.constant 0 : i32
    %c0_i32_1 = arith.constant 0 : i32
    return %arg1, %c0_i32, %c0_i32_0 : i32, i32, i32
  }
  func.func @transform_5(%arg0: i32, %arg1: i32) -> (i32, i32, i32) {
    %c0_i32 = arith.constant 0 : i32
    %c0_i32_0 = arith.constant 0 : i32
    %c0_i32_1 = arith.constant 0 : i32
    return %arg1, %c0_i32, %c0_i32_0 : i32, i32, i32
  }
  func.func @transform_6(%arg0: i32, %arg1: i32) -> (i32, i32, i32) {
    %c0_i32 = arith.constant 0 : i32
    %c0_i32_0 = arith.constant 0 : i32
    %c0_i32_1 = arith.constant 0 : i32
    return %arg1, %c0_i32, %c0_i32_0 : i32, i32, i32
  }
  func.func @transform_7(%arg0: i32, %arg1: i32) -> (i32, i32, i32) {
    %c0_i32 = arith.constant 0 : i32
    %c0_i32_0 = arith.constant 0 : i32
    %c0_i32_1 = arith.constant 0 : i32
    return %arg1, %c0_i32, %c0_i32_0 : i32, i32, i32
  }
  func.func @transform_8(%arg0: i32, %arg1: i32) -> (i32, i32) {
    %c0_i32 = arith.constant 0 : i32
    %c0_i32_0 = arith.constant 0 : i32
    %c0_i32_1 = arith.constant 0 : i32
    return %c0_i32, %c0_i32_0 : i32, i32
  }
  func.func @transform_9(%arg0: i32, %arg1: i32) -> (i32, i32) {
    %c0_i32 = arith.constant 0 : i32
    %c0_i32_0 = arith.constant 0 : i32
    %c0_i32_1 = arith.constant 0 : i32
    return %c0_i32, %c0_i32_0 : i32, i32
  }
  func.func @transform_10(%arg0: i32, %arg1: i32) -> (i32, i32) {
    %c0_i32 = arith.constant 0 : i32
    %c0_i32_0 = arith.constant 0 : i32
    %c0_i32_1 = arith.constant 0 : i32
    return %c0_i32, %c0_i32_0 : i32, i32
  }
  func.func @transform_11(%arg0: i32, %arg1: i32) -> (i32, i32, i32) {
    %c0_i32 = arith.constant 0 : i32
    %c0_i32_0 = arith.constant 0 : i32
    %c0_i32_1 = arith.constant 0 : i32
    return %arg1, %c0_i32, %c0_i32_0 : i32, i32, i32
  }
  func.func @transform_12(%arg0: i32, %arg1: i32) -> (i32, i32, i32) {
    %c0_i32 = arith.constant 0 : i32
    %c0_i32_0 = arith.constant 0 : i32
    %c0_i32_1 = arith.constant 0 : i32
    return %arg1, %c0_i32, %c0_i32_0 : i32, i32, i32
  }
  func.func @transform_13(%arg0: i32, %arg1: i32) -> (i32, i32, i32) {
    %c0_i32 = arith.constant 0 : i32
    %c0_i32_0 = arith.constant 0 : i32
    %c0_i32_1 = arith.constant 0 : i32
    return %arg1, %c0_i32, %c0_i32_0 : i32, i32, i32
  }
  func.func @transform_14(%arg0: i32, %arg1: i32) -> (i32, i32, i32) {
    %c0_i32 = arith.constant 0 : i32
    %c0_i32_0 = arith.constant 0 : i32
    %c0_i32_1 = arith.constant 0 : i32
    return %arg0, %c0_i32, %c0_i32_0 : i32, i32, i32
  }
  func.func @transform_15(%arg0: i32, %arg1: i32) -> (i32, i32, i32) {
    %c0_i32 = arith.constant 0 : i32
    %c0_i32_0 = arith.constant 0 : i32
    %c0_i32_1 = arith.constant 0 : i32
    return %arg0, %c0_i32, %c0_i32_0 : i32, i32, i32
  }
  func.func @transform_16(%arg0: i32, %arg1: i32) -> (i32, i32, i32) {
    %c0_i32 = arith.constant 0 : i32
    %c0_i32_0 = arith.constant 0 : i32
    %c0_i32_1 = arith.constant 0 : i32
    return %arg0, %c0_i32, %c0_i32_0 : i32, i32, i32
  }
}

module attributes {stable_mosaic.version = 11 : i64} {
  func.func @_dp_apply_kernel(%arg0: i32, %arg1: i32, %arg2: memref<1x1xf32, #tpu.memory_space<vmem>>, %arg3: memref<1x32x32xf32, #tpu.memory_space<vmem>>, %arg4: memref<1x32x32xf32, #tpu.memory_space<vmem>>, %arg5: memref<1x32x32xf32, #tpu.memory_space<vmem>>) attributes {dimension_semantics = [#tpu.dimension_semantics<parallel>, #tpu.dimension_semantics<parallel>], iteration_bounds = array<i64: 2, 1>, scalar_prefetch = 0 : i64, scratch_operands = 0 : i64, tpu.core_type = #tpu.core_type<tc>, window_params = [{pipeline_mode = #tpu.pipeline_mode<synchronous>, transform_indices = @transform_0, window_bounds = array<i64: 1, 1>}, {transform_indices = @transform_1, window_bounds = array<i64: 1, 32, 32>}, {transform_indices = @transform_2, window_bounds = array<i64: 1, 32, 32>}, {transform_indices = @transform_3, window_bounds = array<i64: 1, 32, 32>}]} {
    %c0 = arith.constant 0 : index
    %c0_0 = arith.constant 0 : index
    %c0_1 = arith.constant 0 : index
    %0 = vector.load %arg3[%c0, %c0_0, %c0_1] : memref<1x32x32xf32, #tpu.memory_space<vmem>>, vector<1x32x32xf32>
    %1 = vector.shape_cast %0 : vector<1x32x32xf32> to vector<32x32xf32>
    %c0_2 = arith.constant 0 : index
    %c0_3 = arith.constant 0 : index
    %c0_4 = arith.constant 0 : index
    %2 = vector.load %arg4[%c0_2, %c0_3, %c0_4] : memref<1x32x32xf32, #tpu.memory_space<vmem>>, vector<1x32x32xf32>
    %3 = vector.shape_cast %2 : vector<1x32x32xf32> to vector<32x32xf32>
    %4 = tpu.iota {dimensions = array<i32: 0>} : vector<32x32xi32>
    %c32_i32 = arith.constant 32 : i32
    %5 = arith.muli %arg1, %c32_i32 : i32
    %6 = vector.broadcast %5 : i32 to vector<32x32xi32>
    %7 = arith.addi %4, %6 : vector<32x32xi32>
    %8 = tpu.iota {dimensions = array<i32: 1>} : vector<32x32xi32>
    %9 = arith.addi %7, %8 : vector<32x32xi32>
    %c1_i32 = arith.constant 1 : i32
    %10 = vector.broadcast %c1_i32 : i32 to vector<32x32xi32>
    %11 = arith.andi %9, %10 : vector<32x32xi32>
    %c1_i32_5 = arith.constant 1 : i32
    %12 = vector.broadcast %c1_i32_5 : i32 to vector<32x32xi32>
    %13 = arith.cmpi eq, %11, %12 : vector<32x32xi32>
    %14 = arith.addf %1, %3 : vector<32x32xf32>
    %15 = arith.subf %1, %3 : vector<32x32xf32>
    %16 = arith.select %13, %14, %15 : vector<32x32xi1>, vector<32x32xf32>
    %c0_6 = arith.constant 0 : index
    %c0_7 = arith.constant 0 : index
    %17 = vector.load %arg2[%c0_6, %c0_7] : memref<1x1xf32, #tpu.memory_space<vmem>>, vector<1x1xf32>
    %18 = vector.broadcast %17 : vector<1x1xf32> to vector<32x32xf32>
    %19 = arith.subf %16, %18 : vector<32x32xf32>
    %cst = arith.constant 6.28318548 : f32
    %cst_8 = arith.constant 5.000000e-01 : f32
    %20 = arith.mulf %cst, %cst_8 : f32
    %21 = vector.broadcast %20 : f32 to vector<32x32xf32>
    %22 = arith.addf %19, %21 : vector<32x32xf32>
    %cst_9 = arith.constant 0.159154937 : f32
    %23 = vector.broadcast %cst_9 : f32 to vector<32x32xf32>
    %24 = arith.mulf %22, %23 : vector<32x32xf32>
    %25 = math.floor %24 : vector<32x32xf32>
    %cst_10 = arith.constant 6.28318548 : f32
    %26 = vector.broadcast %cst_10 : f32 to vector<32x32xf32>
    %27 = arith.mulf %25, %26 : vector<32x32xf32>
    %28 = arith.subf %22, %27 : vector<32x32xf32>
    %cst_11 = arith.constant 6.28318548 : f32
    %cst_12 = arith.constant 5.000000e-01 : f32
    %29 = arith.mulf %cst_11, %cst_12 : f32
    %30 = vector.broadcast %29 : f32 to vector<32x32xf32>
    %31 = arith.subf %28, %30 : vector<32x32xf32>
    %c0_13 = arith.constant 0 : index
    %c0_14 = arith.constant 0 : index
    %c0_15 = arith.constant 0 : index
    %32 = vector.load %arg5[%c0_13, %c0_14, %c0_15] : memref<1x32x32xf32, #tpu.memory_space<vmem>>, vector<1x32x32xf32>
    %33 = vector.shape_cast %32 : vector<1x32x32xf32> to vector<32x32xf32>
    %34 = vector.shape_cast %31 : vector<32x32xf32> to vector<1x32x32xf32>
    tpu.vector_store %arg5[%c0_13, %c0_14, %c0_15], %34 {strides = array<i32>} : memref<1x32x32xf32, #tpu.memory_space<vmem>>, vector<1x32x32xf32>,
    return
  }
  func.func @transform_0(%arg0: i32, %arg1: i32) -> (i32, i32) {
    %c0_i32 = arith.constant 0 : i32
    %c0_i32_0 = arith.constant 0 : i32
    %c0_i32_1 = arith.constant 0 : i32
    return %c0_i32, %c0_i32_0 : i32, i32
  }
  func.func @transform_1(%arg0: i32, %arg1: i32) -> (i32, i32, i32) {
    %c0_i32 = arith.constant 0 : i32
    %c0_i32_0 = arith.constant 0 : i32
    return %arg0, %arg1, %c0_i32 : i32, i32, i32
  }
  func.func @transform_2(%arg0: i32, %arg1: i32) -> (i32, i32, i32) {
    %c0_i32 = arith.constant 0 : i32
    %c0_i32_0 = arith.constant 0 : i32
    return %arg0, %arg1, %c0_i32 : i32, i32, i32
  }
  func.func @transform_3(%arg0: i32, %arg1: i32) -> (i32, i32, i32) {
    %c0_i32 = arith.constant 0 : i32
    %c0_i32_0 = arith.constant 0 : i32
    return %arg0, %arg1, %c0_i32 : i32, i32, i32
  }
}

</mosaic_0001>

<bundles_post_ra>
// kernel: _holonet_impl.3
= control target key start
LH: loop header
LB: loop body
LE: loop exit
PB: predicated region body
PF: predicated region fallthrough
CT: control target
= control target key end

     0   :  { %s747_s0 = inlined_call_operand.<no memory space> [shape: f32[1,1], index: 0, kind: input, shape index: {}]   ;;  %s748_s1 = inlined_call_operand.vmem [shape: f32[2,32,32], index: 1, kind: input, shape index: {}]   ;;  %s749_s2 = inlined_call_operand.vmem [shape: f32[2,32,32], index: 2, kind: input, shape index: {}]   ;;  %s750_s3 = inlined_call_operand.hbm [shape: f32[2,32,32], index: 3, kind: output, shape index: {}]  }
   0x1   :  { %v8_v0 = vstv %s747_s0 }
   0x2   :  { %9 = vst [vmem:[#allocation2] sm:$0x1] %v8_v0 }
   0x3   :  { %10 = vsyncpa [#allocation4], 0 }
   0x4   :  { %12 = vsyncpa [#allocation4 + $0x1], 0  ;;  %s626_s14 = smov 0   ;;  %s628_s15 = smov 0  }
   0x5   :  { %s630_s16 = smov 0   ;;  %s632_s17 = smov 0  }
   0x6   :  { %s634_s18 = smov 0   ;;  %s636_s19 = smov 0  }
   0x7 LB: > { %s439_s0 = sadd.s32 4294967295, %s597_s19   ;;  %s440_s20 = sadd.s32 4294967294, %s597_s19   ;;  %s597_s19 = sphi %s636_s19, %s18_s19   ;;  %s593_s18 = sphi %s634_s18, %s757_s18   ;;  %s589_s17 = sphi %s632_s17, %s756_s17   ;;  %s585_s16 = sphi %s630_s16, %s755_s16   ;;  %s581_s15 = sphi %s628_s15, %s754_s15   ;;  %s577_s14 = sphi %s626_s14, %s753_s14  }
   0x8   : > { %s30_s21 = sadd.s32 1, %s593_s18  ;;  %s116_s22 = sadd.s32 1, %s585_s16 }
   0x9   : > { %p32_p0 = scmp.ge.s32.totalorder %s30_s21, 2  ;;  %p126_p1 = scmp.ne.s32.totalorder %s585_s16, %s581_s15 }
   0xa   : > { %p127_p2 = scmp.eq.s32.totalorder %s439_s0, 1  ;;  %p132_p3 = scmp.ne.s32.totalorder %s581_s15, %s577_s14 }
   0xb   : > { %s759_s21 = smov (%p32_p0, %s30_s21), 0  ;;  %p133_p5 = scmp.eq.s32.totalorder %s440_s20, 1 }
   0xc   : > { %p666_p4 = por %p127_p2, %p126_p1  ;;  %s111_s24 = ssub.s32 %s593_s18, %s759_s21 }
   0xd   : > { %p443_p6 = scmp.ge.s32.totalorder %s597_s19, 1  ;;  %p114_p7 = scmp.eq.s32.totalorder %s111_s24, 0 }
   0xe   : > { %p673_p8 = por %p133_p5, %p132_p3  ;;  %p180_p9 = scmp.lt.s32.totalorder %s597_s19, 3 }
   0xf   : > { %s679_s26 = scalar_select %p114_p7, %s585_s16, %s116_s22  }
  0x10   : > { %p181_p10 = pnand %p443_p6, %p180_p9 }
  0x11   : > { %p218_p11 = scmp.lt.s32.totalorder (!%p181_p10), %s589_s17, 1  ;;  %s214_s8 = sand.u32 (!%p181_p10), 1, %s581_s15  }
  0x12   : > { %184 = sbr.rel (%p181_p10) target bundleno = 178 (0xb2), region = 32  ;;  %s444_s9 = sshll.u32 (!%p181_p10), %s214_s8, 5 }
  0x13   : > { %s461_s10 = sshll.u32 (!%p181_p10), %s589_s17, 9  ;;  %s216_s11 = scalar_lea.vmem (!%p181_p10), [#allocation3], %s444_s9 }
  0x14   : > { %s342_s12 = sshll.u32 (!%p181_p10), %s216_s11, 4  ;;  %s696_s20 = scalar_lea.hbm (!%p181_p10), %s750_s3, %s461_s10  ;;  %s698_s12 = int_to_ptr.vmem [resolvable:$true] %s342_s12 }
  0x15   : > { %s521_s22 = scalar_lea.vmem (!%p181_p10), %s698_s12, 512  ;;  %s600_s24 = smov (!%p181_p10), [#allocation3]  }
  0x16   : > { %p522_p12 = scmp.ne.s32.totalorder (!%p181_p10), %s698_s12, %s521_s22 }
  0x17   : > { %v449_v1 = vld [vmem:[#allocation2] ss:$0 sm:$0xff]  ;;  %v599_v2 = vmov 0   ;;  %v246_v3 = vlaneseq  ;;  %s219_s27 = scalar_select %p218_p11, %s589_s17, 1  ;;  %vm321_vm4 = vcmask 261120  }
  0x18   : > { %520 = vset.pattern.permute.xlu0 %v599_v2  ;;  %s702_s17 = scalar_lea.sflag [#allocation4], %s214_s8  ;;  %p523_p13 = pnand %p522_p12, %p666_p4 }
  0x19   : > { %290 = vperm.xlu0 %520, %v449_v1   ;;  %v247_v4 = vshrl.u32 %v246_v3, 7  ;;  %s459_s28 = sshll.u32 %s219_s27, 5  ;;  %v258_v8 = vand.u32 127, %v246_v3  ;;  %s525_s27 = sshll.u32 %s600_s24, 4  ;;  %s526_s27 = int_to_ptr.vmem [resolvable:$false] %s525_s27 }
  0x1a   : > { %s225_s4 = scalar_lea.vmem %s748_s1, %s459_s28  ;;  %s235_s7 = scalar_lea.vmem %s749_s2, %s459_s28 }
  0x1b   : > { %v248_v5 = vadd.s32 8, %v247_v4  ;;  %v249_v6 = vadd.s32 16, %v247_v4  ;;  %v250_v7 = vadd.s32 24, %v247_v4  ;;  %v259_v9 = vadd.s32 %v258_v8, %v247_v4  ;;  %v238_v13 = vld [vmem:[%s225_s4] sm:$0xff]  ;;  %v239_v14 = vld [vmem:[%s225_s4 + $0x8] sm:$0xff]  ;;  %v240_v15 = vld [vmem:[%s225_s4 + $0x10] sm:$0xff]  ;;  %p524_p0 = pneg %p523_p13  ;;  %p528_p1 = scmp.lt.s32.totalorder %s698_s12, %s526_s27 }
  0x1c   : > { %v242_v16 = vld [vmem:[%s235_s7] sm:$0xff]  ;;  %v243_v17 = vld [vmem:[%s235_s7 + $0x8] sm:$0xff]  ;;  %v244_v18 = vld [vmem:[%s235_s7 + $0x10] sm:$0xff]  ;;  %s527_s28 = scalar_lea.vmem %s526_s27, 1024 }
  0x1d   : > { %v260_v10 = vadd.s32 %v258_v8, %v248_v5  ;;  %v261_v11 = vadd.s32 %v258_v8, %v249_v6  ;;  %v262_v12 = vadd.s32 %v258_v8, %v250_v7  ;;  %v241_v19 = vld [vmem:[%s225_s4 + $0x18] sm:$0xff]  ;;  %v263_v21 = vand.u32 1, %v259_v9  ;;  %p529_p2 = scmp.lt.s32.totalorder %s527_s28, %s521_s22 }
  0x1e   : > { %v245_v20 = vld [vmem:[%s235_s7 + $0x18] sm:$0xff]  ;;  %v271_v25 = vadd.f32 %v242_v16, %v238_v13  ;;  %v272_v26 = vadd.f32 %v243_v17, %v239_v14  ;;  %v273_v27 = vadd.f32 %v244_v18, %v240_v15  ;;  %v275_v28 = vsub.f32 %v238_v13, %v242_v16 }
  0x1f   : > { %v264_v22 = vand.u32 1, %v260_v10  ;;  %v265_v23 = vand.u32 1, %v261_v11  ;;  %v266_v24 = vand.u32 1, %v262_v12  ;;  %v274_v29 = vadd.f32 %v245_v20, %v241_v19  ;;  %p530_p3 = por %p529_p2, %p528_p1 }
  0x20   : > { %v276_v30 = vsub.f32 %v239_v14, %v243_v17  ;;  %v277_v31 = vsub.f32 %v240_v15, %v244_v18  ;;  %v278_v32 = vsub.f32 %v241_v19, %v245_v20  ;;  %vm267_vm0 = vcmp.eq.s32.totalorder %v263_v21, 1 }
  0x21   : > { %vm268_vm1 = vcmp.eq.s32.totalorder %v264_v22, 1  ;;  %vm269_vm2 = vcmp.eq.s32.totalorder %v265_v23, 1  ;;  %vm270_vm3 = vcmp.eq.s32.totalorder %v266_v24, 1  ;;  %v279_v33 = vsel %vm267_vm0, %v271_v25, %v275_v28  ;;  %p531_p5 = pnand %p530_p3, %p524_p0 }
  0x22   : > { %v280_v34 = vsel %vm268_vm1, %v272_v26, %v276_v30  ;;  %v281_v35 = vsel %vm269_vm2, %v273_v27, %v277_v31  ;;  %v282_v36 = vsel %vm270_vm3, %v274_v29, %v278_v32 }
  0x94   : > { %v291_v37 = vpop.permute.xlu0 %290 }
  0x95   : > { %v293_v38 = vsub.f32 %v279_v33, %v291_v37  ;;  %v294_v39 = vsub.f32 %v280_v34, %v291_v37  ;;  %v295_v40 = vsub.f32 %v281_v35, %v291_v37  ;;  %v296_v41 = vsub.f32 %v282_v36, %v291_v37 }
  0x97   : > { %v297_v42 = vadd.f32 3.1415927, %v293_v38  ;;  %v298_v43 = vadd.f32 3.1415927, %v294_v39  ;;  %v299_v44 = vadd.f32 3.1415927, %v295_v40 }
  0x98   : > { %v300_v45 = vadd.f32 3.1415927, %v296_v41 }
  0x99   : > { %v301_v46 = vmul.f32 0.15915494, %v297_v42  ;;  %v302_v47 = vmul.f32 0.15915494, %v298_v43  ;;  %v303_v48 = vmul.f32 0.15915494, %v299_v44 }
  0x9a   : > { %v304_v49 = vmul.f32 0.15915494, %v300_v45 }
  0x9b   : > { %v305_v50 = vfloor.f32 %v301_v46  ;;  %v306_v51 = vfloor.f32 %v302_v47  ;;  %v307_v52 = vfloor.f32 %v303_v48 }
  0x9c   : > { %v308_v53 = vfloor.f32 %v304_v49 }
  0x9d   : > { %v309_v54 = vmul.f32 6.2831855, %v305_v50  ;;  %v310_v55 = vmul.f32 6.2831855, %v306_v51  ;;  %v311_v56 = vmul.f32 6.2831855, %v307_v52 }
  0x9e   : > { %v312_v57 = vmul.f32 6.2831855, %v308_v53 }
  0x9f   : > { %v313_v58 = vsub.f32 %v297_v42, %v309_v54  ;;  %v314_v59 = vsub.f32 %v298_v43, %v310_v55  ;;  %v315_v60 = vsub.f32 %v299_v44, %v311_v56 }
  0xa0   : > { %v316_v61 = vsub.f32 %v300_v45, %v312_v57 }
  0xa1   : > { %v450_v62 = vadd.f32 -3.1415927, %v313_v58  ;;  %v451_v63 = vadd.f32 -3.1415927, %v314_v59  ;;  %v452_v0 = vadd.f32 -3.1415927, %v315_v60 }
  0xa2   : > { %v453_v1 = vadd.f32 -3.1415927, %v316_v61 }
  0xa3   : > { %322 = vst.msk [vmem:[%s216_s11] sm:$0xff] %vm321_vm4, %v450_v62  ;;  %323 = vst.msk [vmem:[%s216_s11 + $0x8] sm:$0xff] %vm321_vm4, %v451_v63 }
  0xa4   : > { %324 = vst.msk [vmem:[%s216_s11 + $0x10] sm:$0xff] %vm321_vm4, %v452_v0  ;;  %325 = vst.msk [vmem:[%s216_s11 + $0x18] sm:$0xff] %vm321_vm4, %v453_v1 }
  0xa5   : > { %534 = shalt.err (!%p531_p5)
}
  0xa6   : > { %s535_s29 = scalar_lea.hbm %s696_s20, 512  ;;  %s539_s5 = scalar_lea.hbm %s750_s3, 1024 }
  0xa7   : > { %p536_p6 = scmp.ne.s32.totalorder %s696_s20, %s535_s29  ;;  %p540_p10 = scmp.lt.s32.totalorder %s696_s20, %s750_s3 }
  0xa8   : > { %p541_p11 = scmp.lt.s32.totalorder %s539_s5, %s535_s29 }
  0xa9   : > { %p537_p7 = pnand %p536_p6, %p666_p4 }
  0xaa   : > { %p542_p12 = por %p541_p11, %p540_p10 }
  0xab   : > { %p538_p9 = pneg %p537_p7 }
  0xad   : > { %p543_p13 = pnand %p542_p12, %p538_p9 }
  0xaf   : > { %546 = shalt.err (!%p543_p13)
}
  0xb0   : > { %s601_s8 = smov 128   ;;  %s602_s9 = smov 8  }
  0xb1   : > { %462 = dma.vmem_to_hbm [thread:$0]  (%p666_p4), %s698_s12, 512, %s696_s20, %s702_s17, %s601_s8, %s601_s8, %s602_s9  }
  0xb2 PF: > { %p468_p0 = scmp.ge.s32.totalorder %s597_s19, 2  ;;  %s357_s10 = sand.u32 1, %s577_s14  }
  0xb3   : > { %s358_s11 = scalar_lea.sflag [#allocation4], %s357_s10 }
  0xb4   : > { %p465_p1 = pnand %p468_p0, %p673_p8 }
  0xb6   : > { %p466_p2 = pneg %p465_p1 }
  0xb8   : > { %572 = dma.done.wait (%p466_p2), %s358_s11, 512  }
  0xb9   : > { %574 = vsyncadd (%p466_p2), %s358_s11, 4294966784  ;;  %s18_s19 = sadd.s32 1, %s597_s19   ;;  %s753_s14 = smov %s581_s15 }
  0xba   : > { %p15_p3 = scmp.ge.s32.totalorder %s18_s19, 4   ;;  %s754_s15 = smov %s585_s16 }
  0xbb   : > { %s755_s16 = smov %s679_s26  ;;  %s756_s17 = smov %s593_s18 }
  0xbc   : > { %s757_s18 = smov %s759_s21  ;;  %17 = sbr.rel (!%p15_p3) target bundleno = 7 (0x7), region = 70 }
  0xc1   :  { %363 = vsyncpa [#allocation4], 1 }
  0xc2   :  { %365 = vsyncpa [#allocation4 + $0x1], 1 }

// kernel: _holonet_impl.2
= control target key start
LH: loop header
LB: loop body
LE: loop exit
PB: predicated region body
PF: predicated region fallthrough
CT: control target
= control target key end

     0   :  { %s3458_s0 = inlined_call_operand.vmem [shape: bf16[2,32,32], index: 0, kind: input, shape index: {}]   ;;  %s3459_s1 = inlined_call_operand.vmem [shape: bf16[64,32], index: 1, kind: input, shape index: {}]   ;;  %s3460_s2 = inlined_call_operand.vmem [shape: bf16[64,32], index: 2, kind: input, shape index: {}]   ;;  %s3461_s3 = inlined_call_operand.vmem [shape: bf16[1,32,64], index: 3, kind: input, shape index: {}]   ;;  %s3462_s4 = inlined_call_operand.hbm [shape: bf16[1,32,64], index: 4, kind: input, shape index: {}]   ;;  %s3463_s5 = inlined_call_operand.hbm [shape: bf16[1,32,64], index: 5, kind: input, shape index: {}]   ;;  %s3464_s6 = inlined_call_operand.vmem [shape: f32[1,64,64], index: 6, kind: input, shape index: {}]   ;;  %s3465_s7 = inlined_call_operand.vmem [shape: f32[1,64,64], index: 7, kind: input, shape index: {}]   ;;  %s3466_s8 = inlined_call_operand.vmem [shape: bf16[32,64], index: 8, kind: input, shape index: {}]   ;;  %s3467_s9 = inlined_call_operand.hbm [shape: bf16[32,64], index: 9, kind: input, shape index: {}]   ;;  %s3468_s10 = inlined_call_operand.hbm [shape: bf16[32,64], index: 10, kind: input, shape index: {}]   ;;  %s3469_s11 = inlined_call_operand.vmem [shape: bf16[1,64,32], index: 11, kind: input, shape index: {}]   ;;  %s3470_s12 = inlined_call_operand.vmem [shape: bf16[1,64,32], index: 12, kind: input, shape index: {}]   ;;  %s3471_s13 = inlined_call_operand.vmem [shape: bf16[1,64,32], index: 13, kind: input, shape index: {}]   ;;  %s3472_s14 = inlined_call_operand.vmem [shape: f32[2,32,32], index: 14, kind: output, shape index: {0}]   ;;  %s3473_s15 = inlined_call_operand.vmem [shape: f32[2,32,32], index: 15, kind: output, shape index: {1}]   ;;  %s3474_s16 = inlined_call_operand.vmem [shape: f32[2,1,1], index: 16, kind: output, shape index: {2}]  }
   0x1   :  { %3476 = sst [smem:[#allocation16_spill]] %s3458_s0 }
   0x2   :  { %3477 = sst [smem:[#allocation17_spill]] %s3463_s5 }
   0x3   :  { %22 = vsyncpa [#allocation5], 0 }
   0x4   :  { %23 = vsyncpa [#allocation7], 0 }
   0x5   :  { %24 = vsyncpa [#allocation10], 0  ;;  %s3057_s21 = smov 0   ;;  %s3059_s22 = smov 0  }
   0x6   :  { %s3061_s23 = smov 0  }
   0x7 LB: > { %3478 = sst [smem:[#allocation14_spill]] %s2959_s22  ;;  %s2373_s24 = sadd.s32 4294967295, %s2963_s23   ;;  %s2963_s23 = sphi %s3061_s23, %s30_s23   ;;  %s2959_s22 = sphi %s3059_s22, %s3487_s22   ;;  %s2955_s21 = sphi %s3057_s21, %s3486_s21  }
   0x8   : > { %p2375_p0 = scmp.ge.s32.totalorder %s2963_s23, 1  ;;  %p464_p1 = scmp.lt.s32.totalorder %s2963_s23, 3 }
   0x9   : > { %p3075_p2 = scmp.eq.s32.totalorder %s2373_s24, 0  ;;  %s2965_s27 = smov [#allocation6]  }
   0xa   : > { %p3079_p3 = pnand %p2375_p0, %p464_p1  ;;  %s509_s28 = sshll.u32 %s2965_s27, 4  ;;  %s510_s28 = int_to_ptr.vmem [resolvable:$true] %s509_s28 }
   0xb   : > { %s42_s30 = sadd.s32 1, %s2959_s22  ;;  %s2966_s17 = smov [#allocation4]  }
   0xc   : > { %p2731_p4 = pneg %p3079_p3  ;;  %p3092_p6 = scmp.ge.s32.totalorder %s42_s30, 2 }
   0xd   : > { %s493_s18 = sshll.u32 %s2966_s17, 4  ;;  %s2836_s19 = scalar_lea.vmem %s510_s28, 256  ;;  %s494_s18 = int_to_ptr.vmem [resolvable:$true] %s493_s18 }
   0xe   : > { %p3087_p5 = pnand %p3075_p2, %p2731_p4  ;;  %p2837_p8 = scmp.ne.s32.totalorder %s510_s28, %s2836_s19 }
   0xf   : > { %p2844_p11 = scmp.lt.s32.totalorder %s510_s28, %s510_s28  ;;  %p2845_p12 = scmp.lt.s32.totalorder %s2836_s19, %s2836_s19 }
  0x10   : > { %p2827_p7 = pneg %p3087_p5 }
  0x11   : > { %p2846_p13 = por %p2845_p12, %p2844_p11 }
  0x12   : > { %p2839_p9 = pnand %p2837_p8, %p2827_p7 }
  0x14   : > { %p2840_p10 = pneg %p2839_p9 }
  0x16   : > { %p2847_p0 = pnand %p2846_p13, %p2840_p10 }
  0x18   : > { %2850 = shalt.err (!%p2847_p0)
}
  0x19   : > { %s2967_s20 = smov 64   ;;  %s2968_s24 = smov 4  }
  0x1a   : > { %s3483_s5 = sld [smem:[#allocation17_spill]]  ;;  %s3489_s30 = smov (%p3092_p6, %s42_s30), 0 }
  0x1b   : > { %3484 = sst [smem:[#allocation15_spill]] %s3489_s30  ;;  %s2862_s19 = scalar_lea.vmem %s494_s18, 256 }
  0x1c   : > { %p2863_p1 = scmp.ne.s32.totalorder %s494_s18, %s2862_s19  ;;  %p2870_p9 = scmp.lt.s32.totalorder %s494_s18, %s494_s18 }
  0x1d   : > { %p2871_p10 = scmp.lt.s32.totalorder %s2862_s19, %s2862_s19 }
  0x1e   : > { %p2865_p4 = pnand %p2863_p1, %p2827_p7 }
  0x1f   : > { %p2872_p11 = por %p2871_p10, %p2870_p9 }
  0x20   : > { %2737 = dma.hbm_to_vmem [thread:$0]  (!%p3087_p5), %s3483_s5, 256, %s510_s28, [#allocation7], %s2967_s20, %s2967_s20, %s2968_s24  }
  0x21   : > { %p2866_p8 = pneg %p2865_p4 }
  0x23   : > { %p2873_p12 = pnand %p2872_p11, %p2866_p8 }
  0x25   : > { %2876 = shalt.err (!%p2873_p12)
}
  0x26   : > { %2734 = dma.hbm_to_vmem [thread:$0]  (!%p3087_p5), %s3462_s4, 256, %s494_s18, [#allocation5], %s2967_s20, %s2967_s20, %s2968_s24  }
  0x27   : > { %s2969_s27 = smov [#allocation8]   ;;  %s2970_s5 = smov [#allocation9]  }
  0x28   : > { %s541_s17 = sshll.u32 %s2969_s27, 4  ;;  %s554_s30 = sshll.u32 %s2970_s5, 4  ;;  %s542_s17 = int_to_ptr.vmem [resolvable:$true] %s541_s17  ;;  %s555_s30 = int_to_ptr.vmem [resolvable:$true] %s554_s30 }
  0x29   : > { %s2888_s22 = scalar_lea.vmem %s542_s17, 256  ;;  %p2896_p1 = scmp.lt.s32.totalorder %s542_s17, %s542_s17 }
  0x2a   : > { %p2889_p6 = scmp.ne.s32.totalorder %s542_s17, %s2888_s22  ;;  %p2897_p4 = scmp.lt.s32.totalorder %s2888_s22, %s2888_s22 }
  0x2c   : > { %p2891_p13 = pnand %p2889_p6, %p2827_p7  ;;  %p2898_p8 = por %p2897_p4, %p2896_p1 }
  0x2e   : > { %p2892_p0 = pneg %p2891_p13 }
  0x30   : > { %p2899_p9 = pnand %p2898_p8, %p2892_p0 }
  0x32   : > { %2902 = shalt.err (!%p2899_p9)
}
  0x33   : > { %2740 = dma.hbm_to_vmem [thread:$0]  (!%p3087_p5), %s3467_s9, 256, %s542_s17, [#allocation7], %s2967_s20, %s2967_s20, %s2968_s24  }
  0x34   : > { %s2914_s5 = scalar_lea.vmem %s555_s30, 256  ;;  %p2922_p6 = scmp.lt.s32.totalorder %s555_s30, %s555_s30 }
  0x35   : > { %p2915_p10 = scmp.ne.s32.totalorder %s555_s30, %s2914_s5  ;;  %p2923_p13 = scmp.lt.s32.totalorder %s2914_s5, %s2914_s5 }
  0x37   : > { %p2917_p11 = pnand %p2915_p10, %p2827_p7  ;;  %p2924_p0 = por %p2923_p13, %p2922_p6 }
  0x39   : > { %p2918_p12 = pneg %p2917_p11 }
  0x3b   : > { %p2925_p1 = pnand %p2924_p0, %p2918_p12 }
  0x3d   : > { %2928 = shalt.err (!%p2925_p1)
}
  0x3e   : > { %2743 = dma.hbm_to_vmem [thread:$0]  (!%p3087_p5), %s3468_s10, 256, %s555_s30, [#allocation10], %s2967_s20, %s2967_s20, %s2968_s24  }
  0x3f   : > { %602 = sbr.rel (%p3079_p3) target bundleno = 1145 (0x479), region = 76 }
  0x44   : > { %2942 = dma.done.wait (%p3075_p2), [#allocation5], 256  }
  0x45   : > { %2944 = vsyncadd (%p3075_p2), [#allocation5], 4294967040 }
  0x46   : > { %2946 = dma.done.wait (%p3075_p2), [#allocation7], 512  }
  0x47   : > { %2948 = vsyncadd (%p3075_p2), [#allocation7], 4294966784 }
  0x48   : > { %2950 = dma.done.wait (%p3075_p2), [#allocation10], 256  }
  0x49   : > { %2952 = vsyncadd (%p3075_p2), [#allocation10], 4294967040  ;;  %p702_p3 = scmp.lt.s32.totalorder %s2955_s21, 1  ;;  %s3485_s20 = sld [smem:[#allocation16_spill]]  ;;  %v2785_v2 = vld [vmem:[%s3459_s1] sm:$0xff]   ;;  %vm799_vm0 = vcmask 261120  }
  0x4a   : > { %v2786_v3 = vld [vmem:[%s3459_s1 + $0x10] sm:$0xff]   ;;  %2583 = vmatprep.mubr.msk.bf16.mxu0 %vm799_vm0, %v2785_v2  ;;  %v2787_v4 = vld [vmem:[%s3459_s1 + $0x8] sm:$0xff]   ;;  %v2788_v5 = vld [vmem:[%s3459_s1 + $0x18] sm:$0xff]   ;;  %vm909_vm1 = vcmask 257024   ;;  %vm1541_vm2 = vcmask 523264   ;;  %vm2114_vm3 = vcmask 0  }
  0x4b   : > { %s3491_s21 = smov (!%p702_p3, %s2955_s21), 1  ;;  %2587 = vmatprep.mubr.msk.bf16.mxu1 %vm799_vm0, %v2786_v3  ;;  %v2789_v6 = vld [vmem:[%s3460_s2] sm:$0xff]   ;;  %v2790_v7 = vld [vmem:[%s3460_s2 + $0x8] sm:$0xff]   ;;  %v2791_v8 = vld [vmem:[%s3460_s2 + $0x10] sm:$0xff]  }
  0x4c   : > { %s2494_s26 = sshll.u32 %s3491_s21, 4  ;;  %v2792_v9 = vld [vmem:[%s3460_s2 + $0x18] sm:$0xff]   ;;  %v2793_v10 = vld [vmem:[%s3461_s3 + $0x8] sm:$0xff]   ;;  %v2794_v11 = vld [vmem:[%s3461_s3] sm:$0xff]   ;;  %s2495_s29 = sshll.u32 %s3491_s21, 5 }
  0x4d   : > { %v2799_v12 = vld [vmem:[#allocation4 + $0x8] sm:$0xff]   ;;  %v3206_v13 = vld [vmem:[#allocation6 + $0x8] sm:$0xff]   ;;  %v2801_v14 = vld [vmem:[#allocation4] sm:$0xff]   ;;  %s3391_s25 = scalar_lea.vmem %s3473_s15, %s2495_s29  ;;  %s749_s19 = scalar_lea.vmem %s3474_s16, %s3491_s21 }
  0x4e   : > { %v2803_v50 = vld [vmem:[#allocation6] sm:$0xff]  }
  0x4f   : > { %s706_s24 = scalar_lea.vmem %s3485_s20, %s2494_s26 }
  0x50   : > { %v2783_v0 = vld [vmem:[%s706_s24 + $0x8] sm:$0xff]   ;;  %v2784_v1 = vld [vmem:[%s706_s24] sm:$0xff]   ;;  %s3386_s24 = scalar_lea.vmem %s3472_s14, %s2495_s29 }
  0x51   : > { %2579 = vmatprep.subr.bf16.mxu0 %v2783_v0  ;;  %2711 = vmatprep.subr.bf16.mxu1 %v2783_v0 }
  0x52   : > { %2580 = vmatpush3.bf16.msra.mxu0 %v2783_v0  ;;  %2713 = vmatpush3.bf16.msra.mxu1 %v2783_v0 }
  0x53   : > { %2581 = vmatprep.subr.bf16.mxu0 %v2784_v1  ;;  %2712 = vmatprep.subr.bf16.mxu1 %v2784_v1 }
  0x56   : > { %2582 = vmatpush3.bf16.msra.mxu0 %v2784_v1  ;;  %2714 = vmatpush3.bf16.msra.mxu1 %v2784_v1 }
  0x57   : > { %2591 = vmatprep.subr.bf16.mxu1 %v2783_v0  ;;  %2603 = vmatprep.subr.bf16.mxu0 %v2793_v10 }
  0x59   : > { %2584 = vmatmul.mubr.msk.bf16.vlgmr.msra.gmra.mxu0 %vm799_vm0, %v2787_v4  ;;  %2588 = vmatmul.mubr.msk.bf16.vlgmr.msra.gmra.mxu1 %vm799_vm0, %v2788_v5 }
  0x5a   : > { %2592 = vmatpush3.bf16.msra.mxu1 %v2783_v0  ;;  %2595 = vmatprep.mubr.msk.bf16.mxu1 %vm799_vm0, %v2789_v6 }
  0x5b   : > { %2593 = vmatprep.subr.bf16.mxu1 %v2784_v1  ;;  %2604 = vmatpush3.bf16.msra.mxu0 %v2793_v10 }
  0x5c   : > { %2605 = vmatprep.subr.bf16.mxu0 %v2794_v11 }
  0x5e   : > { %2594 = vmatpush3.bf16.msra.mxu1 %v2784_v1 }
  0x5f   : > { %2606 = vmatpush3.bf16.msra.mxu0 %v2794_v11  ;;  %2615 = vmatprep.subr.bf16.mxu1 %v2799_v12 }
  0x60   : > { %2627 = vmatprep.subr.bf16.mxu0 %v3206_v13 }
  0x61   : > { %2596 = vmatmul.mubr.msk.bf16.vlgmr.msra.gmra.mxu1 %vm799_vm0, %v2790_v7 }
  0x62   : > { %2599 = vmatprep.mubr.msk.bf16.mxu1 %vm799_vm0, %v2791_v8  ;;  %2616 = vmatpush3.bf16.msra.mxu1 %v2799_v12 }
  0x63   : > { %2617 = vmatprep.subr.bf16.mxu1 %v2801_v14 }
  0x66   : > { %2618 = vmatpush3.bf16.msra.mxu1 %v2801_v14 }
  0x69   : > { %2600 = vmatmul.mubr.msk.bf16.gmra.mxu1 %vm799_vm0, %v2792_v9 }
 0x119   : > { %v2585_v15 = vpop.f32.mrf.mxu0  ;;  %v2589_v16 = vpop.f32.mrf.mxu1 }
 0x11a   : > { %v2499_v17 = vpack.c.bf16 %v2585_v15, %v2585_v15  ;;  %v2503_v18 = vpack.c.bf16 %v2589_v16, %v2589_v16 }
 0x11b   : > { %v846_v19 = vpop.f32.mrf.mxu0  ;;  %v862_v20 = vpop.f32.mrf.mxu1 }
 0x11c   : > { %912 = vst.msk [vmem:[#allocation2 + $0x8] sm:$0xf] %vm909_vm1, %v2499_v17  ;;  %916 = vst.msk [vmem:[#allocation2 + $0x18] sm:$0xf] %vm909_vm1, %v2503_v18  ;;  %v2497_v21 = vpack.c.bf16 %v846_v19, %v846_v19  ;;  %v2501_v22 = vpack.c.bf16 %v862_v20, %v862_v20  ;;  %v2807_v20 = vld [vmem:[%s3466_s8] sm:$0xff]  }
 0x11d   : > { %v2586_v23 = vpop.f32.mrf.mxu0  ;;  %v2590_v24 = vpop.f32.mrf.mxu1 }
 0x11e   : > { %910 = vst.msk [vmem:[#allocation2] sm:$0xf] %vm909_vm1, %v2497_v21  ;;  %914 = vst.msk [vmem:[#allocation2 + $0x10] sm:$0xf] %vm909_vm1, %v2501_v22  ;;  %v2500_v25 = vpack.c.bf16 %v2586_v23, %v2586_v23  ;;  %v2504_v26 = vpack.c.bf16 %v2590_v24, %v2590_v24  ;;  %v2808_v21 = vld [vmem:[#allocation8] sm:$0xff]  }
 0x11f   : > { %v849_v27 = vpop.f32.mrf.mxu0  ;;  %v865_v28 = vpop.f32.mrf.mxu1 }
 0x120   : > { %913 = vst.msk [vmem:[#allocation2 + $0xc] sm:$0xf] %vm909_vm1, %v2500_v25  ;;  %917 = vst.msk [vmem:[#allocation2 + $0x1c] sm:$0xf] %vm909_vm1, %v2504_v26  ;;  %v2498_v29 = vpack.c.bf16 %v849_v27, %v849_v27  ;;  %v2502_v30 = vpack.c.bf16 %v865_v28, %v865_v28 }
 0x121   : > { %v2597_v31 = vpop.f32.mrf.mxu1 }
 0x122   : > { %911 = vst.msk [vmem:[#allocation2 + $0x4] sm:$0xf] %vm909_vm1, %v2498_v29  ;;  %915 = vst.msk [vmem:[#allocation2 + $0x14] sm:$0xf] %vm909_vm1, %v2502_v30  ;;  %v2507_v32 = vpack.c.bf16 %v2597_v31, %v2597_v31 }
 0x123   : > { %v992_v33 = vpop.f32.mrf.mxu1  ;;  %v1073_v47 = vld [vmem:[#allocation2 + $0x8] sm:$0xf]  ;;  %v1077_v57 = vld [vmem:[#allocation2 + $0x18] sm:$0xf] }
 0x124   : > { %1057 = vst.msk [vmem:[#allocation3 + $0x8] sm:$0xf] %vm909_vm1, %v2507_v32  ;;  %v2505_v34 = vpack.c.bf16 %v992_v33, %v992_v33 }
 0x125   : > { %v2598_v35 = vpop.f32.mrf.mxu1  ;;  %v1071_v39 = vld [vmem:[#allocation2] sm:$0xf]  ;;  %v1075_v43 = vld [vmem:[#allocation2 + $0x10] sm:$0xf] }
 0x126   : > { %1055 = vst.msk [vmem:[#allocation3] sm:$0xf] %vm909_vm1, %v2505_v34  ;;  %v2508_v36 = vpack.c.bf16 %v2598_v35, %v2598_v35 }
 0x127   : > { %v995_v37 = vpop.f32.mrf.mxu1  ;;  %v1074_v40 = vld [vmem:[#allocation2 + $0xc] sm:$0xf]  ;;  %v1078_v61 = vld [vmem:[#allocation2 + $0x1c] sm:$0xf] }
 0x128   : > { %1058 = vst.msk [vmem:[#allocation3 + $0xc] sm:$0xf] %vm909_vm1, %v2508_v36  ;;  %v2506_v38 = vpack.c.bf16 %v995_v37, %v995_v37  ;;  %v2433_v49 = vcombine.low %v1073_v47, %v1074_v40  ;;  %v2435_v3 = vcombine.low %v1077_v57, %v1078_v61 }
 0x129   : > { %v2601_v41 = vpop.f32.mrf.mxu1  ;;  %v1072_v42 = vld [vmem:[#allocation2 + $0x4] sm:$0xf]  ;;  %v1076_v44 = vld [vmem:[#allocation2 + $0x14] sm:$0xf] }
 0x12a   : > { %1056 = vst.msk [vmem:[#allocation3 + $0x4] sm:$0xf] %vm909_vm1, %v2506_v38  ;;  %v2511_v45 = vpack.c.bf16 %v2601_v41, %v2601_v41  ;;  %v2432_v46 = vcombine.low %v1071_v39, %v1072_v42  ;;  %v2434_v52 = vcombine.low %v1075_v43, %v1076_v44 }
 0x12b   : > { %v1008_v48 = vpop.f32.mrf.mxu1  ;;  %v1081_v58 = vld [vmem:[#allocation3 + $0x8] sm:$0xf] }
 0x12c   : > { %1061 = vst.msk [vmem:[#allocation3 + $0x18] sm:$0xf] %vm909_vm1, %v2511_v45  ;;  %v2509_v51 = vpack.c.bf16 %v1008_v48, %v1008_v48  ;;  %2607 = vmatprep.mubr.msk.bf16.mxu0 %vm799_vm0, %v2432_v46  ;;  %v1316_v9 = vadd.bf16 %v1081_v58, %v1073_v47  ;;  %v1462_v45 = vld [vmem:[%s3464_s6 + $0x18] sm:$0xff] }
 0x12d   : > { %v2602_v53 = vpop.f32.mrf.mxu1  ;;  %2608 = vmatmul.mubr.msk.bf16.vlgmr.msra.gmra.mxu0 %vm799_vm0, %v2433_v49  ;;  %v1079_v56 = vld [vmem:[#allocation3] sm:$0xf]  ;;  %v1470_v47 = vld [vmem:[%s3465_s7 + $0x18] sm:$0xff]  ;;  %v1465_v49 = vld [vmem:[%s3464_s6 + $0x30] sm:$0xff] }
 0x12e   : > { %1059 = vst.msk [vmem:[#allocation3 + $0x10] sm:$0xf] %vm909_vm1, %v2509_v51  ;;  %v2512_v54 = vpack.c.bf16 %v2602_v53, %v2602_v53  ;;  %2628 = vmatpush3.bf16.msra.mxu0 %v3206_v13  ;;  %2611 = vmatprep.mubr.msk.bf16.mxu0 %vm799_vm0, %v2434_v52  ;;  %v1314_v1 = vadd.bf16 %v1079_v56, %v1071_v39 }
 0x12f   : > { %v1011_v55 = vpop.f32.mrf.mxu1  ;;  %2629 = vmatprep.subr.bf16.mxu0 %v2803_v50  ;;  %v1082_v59 = vld [vmem:[#allocation3 + $0xc] sm:$0xf] }
 0x130   : > { %1062 = vst.msk [vmem:[#allocation3 + $0x1c] sm:$0xf] %vm909_vm1, %v2512_v54  ;;  %v2510_v60 = vpack.c.bf16 %v1011_v55, %v1011_v55  ;;  %v2443_v62 = vcombine.low %v1081_v58, %v1082_v59  ;;  %v1317_v5 = vadd.bf16 %v1082_v59, %v1074_v40 }
 0x131   : > { %v1080_v63 = vld [vmem:[#allocation3 + $0x4] sm:$0xf] }
 0x132   : > { %1060 = vst.msk [vmem:[#allocation3 + $0x14] sm:$0xf] %vm909_vm1, %v2510_v60  ;;  %v2442_v0 = vcombine.low %v1079_v56, %v1080_v63  ;;  %2630 = vmatpush3.bf16.msra.mxu0 %v2803_v50  ;;  %v1315_v2 = vadd.bf16 %v1080_v63, %v1072_v42  ;;  %v2453_v15 = vcombine.low %v1316_v9, %v1317_v5  ;;  %v1473_v50 = vld [vmem:[%s3465_s7 + $0x30] sm:$0xff]  ;;  %v1463_v60 = vld [vmem:[%s3464_s6 + $0x20] sm:$0xff] }
 0x133   : > { %v1085_v7 = vld [vmem:[#allocation3 + $0x18] sm:$0xf] }
 0x134   : > { %2619 = vmatprep.mubr.msk.bf16.mxu1 %vm799_vm0, %v2442_v0  ;;  %v2452_v4 = vcombine.low %v1314_v1, %v1315_v2  ;;  %v1320_v18 = vadd.bf16 %v1085_v7, %v1077_v57 }
 0x135   : > { %2612 = vmatmul.mubr.msk.bf16.gmra.mxu0 %vm799_vm0, %v2435_v3  ;;  %2620 = vmatmul.mubr.msk.bf16.vlgmr.msra.gmra.mxu1 %vm799_vm0, %v2443_v62  ;;  %v1083_v6 = vld [vmem:[#allocation3 + $0x10] sm:$0xf] }
 0x136   : > { %2631 = vmatprep.mubr.msk.bf16.mxu0 %vm799_vm0, %v2452_v4  ;;  %v1318_v13 = vadd.bf16 %v1083_v6, %v1075_v43  ;;  %v3256_v43 = vld [vmem:[%s3464_s6 + $0x10] sm:$0xff] }
 0x137   : > { %v1086_v8 = vld [vmem:[#allocation3 + $0x1c] sm:$0xf] }
 0x138   : > { %v2445_v11 = vcombine.low %v1085_v7, %v1086_v8  ;;  %v1321_v17 = vadd.bf16 %v1086_v8, %v1078_v61  ;;  %v1471_v61 = vld [vmem:[%s3465_s7 + $0x20] sm:$0xff]  ;;  %v1474_v7 = vld [vmem:[%s3465_s7 + $0x38] sm:$0xff] }
 0x139   : > { %v1084_v10 = vld [vmem:[#allocation3 + $0x14] sm:$0xf] }
 0x13a   : > { %v2444_v12 = vcombine.low %v1083_v6, %v1084_v10  ;;  %v1319_v14 = vadd.bf16 %v1084_v10, %v1076_v44  ;;  %v2455_v19 = vcombine.low %v1320_v18, %v1321_v17  ;;  %v1469_v44 = vld [vmem:[%s3465_s7 + $0x10] sm:$0xff]  ;;  %v1466_v6 = vld [vmem:[%s3464_s6 + $0x38] sm:$0xff] }
 0x13c   : > { %2623 = vmatprep.mubr.msk.bf16.mxu1 %vm799_vm0, %v2444_v12  ;;  %v2454_v16 = vcombine.low %v1318_v13, %v1319_v14  ;;  %v1464_v14 = vld [vmem:[%s3464_s6 + $0x28] sm:$0xff] }
 0x13d   : > { %2624 = vmatmul.mubr.msk.bf16.gmra.mxu1 %vm799_vm0, %v2445_v11  ;;  %2632 = vmatmul.mubr.msk.bf16.vlgmr.msra.gmra.mxu0 %vm799_vm0, %v2453_v15  ;;  %v1472_v15 = vld [vmem:[%s3465_s7 + $0x28] sm:$0xff] }
 0x13e   : > { %2635 = vmatprep.mubr.msk.bf16.mxu0 %vm799_vm0, %v2454_v16  ;;  %2647 = vmatprep.mubr.msk.bf16.mxu1 %vm1541_vm2, %v2807_v20 }
 0x145   : > { %2636 = vmatmul.mubr.msk.bf16.gmra.mxu0 %vm799_vm0, %v2455_v19 }
 0x146   : > { %2659 = vmatprep.mubr.msk.bf16.mxu0 %vm1541_vm2, %v2808_v21 }
 0x1ed   : > { %v2609_v22 = vpop.f32.mrf.mxu0 }
 0x1ef   : > { %v3243_v23 = vpop.f32.mrf.mxu0 }
 0x1f1   : > { %v2610_v24 = vpop.f32.mrf.mxu0 }
 0x1f3   : > { %v3245_v25 = vpop.f32.mrf.mxu0 }
 0x1f5   : > { %v2613_v26 = vpop.f32.mrf.mxu0  ;;  %v2621_v27 = vpop.f32.mrf.mxu1 }
 0x1f6   : > { %v1437_v40 = vsub.f32 %v2609_v22, %v2621_v27 }
 0x1f7   : > { %v1186_v28 = vpop.f32.mrf.mxu0  ;;  %v3247_v29 = vpop.f32.mrf.mxu1 }
 0x1f8   : > { %v3274_v53 = vmul.f32 %v3256_v43, %v1437_v40  ;;  %v3276_v54 = vmul.f32 %v1469_v44, %v1437_v40 }
 0x1f9   : > { %v2614_v30 = vpop.f32.mrf.mxu0  ;;  %v2622_v31 = vpop.f32.mrf.mxu1 }
 0x1fa   : > { %v1438_v41 = vsub.f32 %v2610_v24, %v2622_v31 }
 0x1fb   : > { %v3249_v32 = vpop.f32.mrf.mxu0  ;;  %v1286_v33 = vpop.f32.mrf.mxu1 }
 0x1fc   : > { %v3278_v55 = vmul.f32 %v1462_v45, %v1438_v41  ;;  %v3280_v58 = vmul.f32 %v1470_v47, %v1438_v41  ;;  %v3283_v59 = vsub.f32 %v3245_v25, %v1286_v33 }
 0x1fd   : > { %v2625_v34 = vpop.f32.mrf.mxu1  ;;  %v2633_v35 = vpop.f32.mrf.mxu0 }
 0x1fe   : > { %v1445_v38 = vsub.f32 %v2633_v35, %v2609_v22  ;;  %v1441_v48 = vsub.f32 %v2613_v26, %v2625_v34 }
 0x1ff   : > { %v1299_v36 = vpop.f32.mrf.mxu1  ;;  %v3251_v37 = vpop.f32.mrf.mxu0 }
 0x200   : > { %v1453_v51 = vsub.f32 %v1445_v38, %v2621_v27  ;;  %v1439_v56 = vsub.f32 %v1186_v28, %v1299_v36  ;;  %v1481_v1 = vmul.f32 %v1465_v49, %v1441_v48  ;;  %v1513_v2 = vmul.f32 %v1473_v50, %v1441_v48 }
 0x201   : > { %v2634_v39 = vpop.f32.mrf.mxu0  ;;  %v2626_v42 = vpop.f32.mrf.mxu1  ;;  %v1443_v3 = vsub.f32 %v3251_v37, %v3243_v23 }
 0x202   : > { %v1446_v62 = vsub.f32 %v2634_v39, %v2610_v24  ;;  %v1442_v4 = vsub.f32 %v2614_v30, %v2626_v42  ;;  %v3293_v5 = vmul.f32 %v1469_v44, %v1453_v51  ;;  %v1479_v12 = vmul.f32 %v1463_v60, %v1439_v56 }
 0x203   : > { %v1407_v46 = vpop.f32.mrf.mxu0  ;;  %v1302_v57 = vpop.f32.mrf.mxu1  ;;  %v1511_v13 = vmul.f32 %v1471_v61, %v1439_v56 }
 0x204   : > { %v1440_v8 = vsub.f32 %v3249_v32, %v1302_v57  ;;  %v1444_v16 = vsub.f32 %v1407_v46, %v3245_v25  ;;  %v1454_v18 = vsub.f32 %v1446_v62, %v2622_v31  ;;  %v1482_v24 = vmul.f32 %v1466_v6, %v1442_v4 }
 0x205   : > { %v2637_v52 = vpop.f32.mrf.mxu0  ;;  %v1435_v62 = vsub.f32 %v3243_v23, %v3247_v29 }
 0x206   : > { %v1449_v63 = vsub.f32 %v2637_v52, %v2613_v26  ;;  %v1514_v26 = vmul.f32 %v1474_v7, %v1442_v4  ;;  %v1512_v35 = vmul.f32 %v1472_v15, %v1440_v8  ;;  %v1452_v39 = vsub.f32 %v1444_v16, %v1286_v33  ;;  %v1460_v33 = vld [vmem:[%s3464_s6 + $0x8] sm:$0xff]  ;;  %v2813_v16 = vld [vmem:[%s3469_s11 + $0x18] sm:$0xff]  }
 0x207   : > { %v1420_v0 = vpop.f32.mrf.mxu0  ;;  %v1486_v25 = vmul.f32 %v1470_v47, %v1454_v18  ;;  %v1476_v23 = vmul.f32 %v1460_v33, %v3283_v59 }
 0x208   : > { %v1457_v9 = vsub.f32 %v1449_v63, %v2625_v34  ;;  %v1447_v10 = vsub.f32 %v1420_v0, %v1186_v28  ;;  %v1480_v34 = vmul.f32 %v1464_v14, %v1440_v8  ;;  %v1459_v0 = vld [vmem:[%s3464_s6] sm:$0xff] }
 0x209   : > { %v2638_v11 = vpop.f32.mrf.mxu0  ;;  %v1494_v63 = vsub.f32 %v3278_v55, %v1486_v25  ;;  %v1493_v55 = vsub.f32 %v3274_v53, %v3293_v5  ;;  %v2818_v25 = vld [vmem:[%s3471_s13 + $0x18] sm:$0xff]  }
 0x20a   : > { %v1450_v17 = vsub.f32 %v2638_v11, %v2614_v30  ;;  %v1489_v19 = vmul.f32 %v1473_v50, %v1457_v9  ;;  %v1505_v20 = vmul.f32 %v1465_v49, %v1457_v9  ;;  %v1455_v21 = vsub.f32 %v1447_v10, %v1299_v36 }
 0x20b   : > { %v1423_v22 = vpop.f32.mrf.mxu0  ;;  %v1502_v30 = vmul.f32 %v1462_v45, %v1454_v18  ;;  %v1468_v45 = vld [vmem:[%s3465_s7 + $0x8] sm:$0xff]  ;;  %v1475_v9 = vmul.f32 %v1459_v0, %v1435_v62  ;;  %v1528_v11 = vpack.c.bf16 %v1494_v63, %v1493_v55 }
 0x20c   : > { %v1458_v27 = vsub.f32 %v1450_v17, %v2626_v42  ;;  %v1448_v28 = vsub.f32 %v1423_v22, %v3249_v32  ;;  %v1487_v37 = vmul.f32 %v1471_v61, %v1455_v21  ;;  %v1503_v38 = vmul.f32 %v1463_v60, %v1455_v21  ;;  %v2809_v18 = vld [vmem:[%s3466_s8 + $0x8] sm:$0xff]   ;;  %v2811_v21 = vld [vmem:[#allocation9] sm:$0xff]  }
 0x20d   : > { %v1497_v31 = vsub.f32 %v1481_v1, %v1489_v19  ;;  %v1521_v46 = vadd.f32 %v1513_v2, %v1505_v20  ;;  %v1501_v42 = vmul.f32 %v3256_v43, %v1453_v51  ;;  %v1451_v32 = vsub.f32 %v1443_v3, %v3247_v29  ;;  %v1467_v1 = vld [vmem:[%s3465_s7] sm:$0xff]  ;;  %v2810_v19 = vld [vmem:[#allocation8 + $0x8] sm:$0xff]  }
 0x20e   : > { %v1490_v40 = vmul.f32 %v1474_v7, %v1458_v27  ;;  %v1506_v41 = vmul.f32 %v1466_v6, %v1458_v27  ;;  %v1456_v44 = vsub.f32 %v1448_v28, %v1302_v57  ;;  %v1495_v52 = vsub.f32 %v1479_v12, %v1487_v37 }
 0x20f   : > { %v1519_v56 = vadd.f32 %v1511_v13, %v1503_v38  ;;  %v1484_v43 = vmul.f32 %v1468_v45, %v1452_v39  ;;  %v1500_v51 = vmul.f32 %v1460_v33, %v1452_v39  ;;  %v1518_v4 = vadd.f32 %v3280_v58, %v1502_v30  ;;  %v2812_v38 = vld [vmem:[#allocation9 + $0x8] sm:$0xff]   ;;  %v2814_v39 = vld [vmem:[%s3469_s11 + $0x10] sm:$0xff]  }
 0x210   : > { %v1488_v48 = vmul.f32 %v1472_v15, %v1456_v44  ;;  %v1504_v36 = vmul.f32 %v1464_v14, %v1456_v44  ;;  %v1498_v49 = vsub.f32 %v1482_v24, %v1490_v40  ;;  %v1522_v50 = vadd.f32 %v1514_v26, %v1506_v41  ;;  %v2815_v40 = vld [vmem:[%s3469_s11 + $0x8] sm:$0xff]   ;;  %v2816_v41 = vld [vmem:[%s3469_s11] sm:$0xff]   ;;  %v2817_v44 = vld [vmem:[%s3470_s12 + $0x18] sm:$0xff]  }
 0x211   : > { %v1508_v29 = vmul.f32 %v1468_v45, %v3283_v59  ;;  %v1483_v6 = vmul.f32 %v1467_v1, %v1451_v32  ;;  %v1499_v7 = vmul.f32 %v1459_v0, %v1451_v32  ;;  %v1517_v8 = vadd.f32 %v3276_v54, %v1501_v42  ;;  %v2819_v30 = vld [vmem:[%s3470_s12 + $0x10] sm:$0xff]   ;;  %v2824_v0 = vld [vmem:[%s3471_s13] sm:$0xff]  }
 0x212   : > { %v1530_v47 = vpack.c.bf16 %v1498_v49, %v1497_v31  ;;  %v1604_v57 = vpack.c.bf16 %v1522_v50, %v1521_v46  ;;  %v1496_v60 = vsub.f32 %v1480_v34, %v1488_v48  ;;  %v1520_v61 = vadd.f32 %v1512_v35, %v1504_v36 }
 0x213   : > { %v1507_v10 = vmul.f32 %v1467_v1, %v1435_v62  ;;  %v1602_v12 = vpack.c.bf16 %v1518_v4, %v1517_v8  ;;  %v1492_v58 = vsub.f32 %v1476_v23, %v1484_v43  ;;  %v1516_v13 = vadd.f32 %v1508_v29, %v1500_v51  ;;  %v2820_v62 = vld [vmem:[%s3471_s13 + $0x10] sm:$0xff]   ;;  %v2822_v43 = vld [vmem:[%s3471_s13 + $0x8] sm:$0xff]  }
 0x214   : > { %2639 = vmatprep.subr.bf16.mxu1 %v1530_v47  ;;  %2651 = vmatprep.subr.bf16.mxu0 %v1604_v57  ;;  %v1529_v2 = vpack.c.bf16 %v1496_v60, %v1495_v52  ;;  %v1603_v3 = vpack.c.bf16 %v1520_v61, %v1519_v56  ;;  %v1491_v59 = vsub.f32 %v1475_v9, %v1483_v6 }
 0x215   : > { %2640 = vmatpush3.bf16.msra.mxu1 %v1530_v47  ;;  %2652 = vmatpush3.bf16.msra.mxu0 %v1604_v57  ;;  %v1515_v14 = vadd.f32 %v1507_v10, %v1499_v7  ;;  %v1681_v5 = vadd.f32 %v1522_v50, %v1498_v49  ;;  %v1680_v54 = vadd.f32 %v1521_v46, %v1497_v31  ;;  %v2821_v31 = vld [vmem:[%s3470_s12 + $0x8] sm:$0xff]   ;;  %v2823_v46 = vld [vmem:[%s3470_s12] sm:$0xff]  }
 0x216   : > { %2641 = vmatprep.subr.bf16.mxu1 %v1529_v2  ;;  %2653 = vmatprep.subr.bf16.mxu0 %v1603_v3  ;;  %v1527_v15 = vpack.c.bf16 %v1492_v58, %v1491_v59  ;;  %v1679_v20 = vadd.f32 %v1520_v61, %v1496_v60  ;;  %v1678_v22 = vadd.f32 %v1519_v56, %v1495_v52 }
 0x217   : > { %v1601_v53 = vpack.c.bf16 %v1516_v13, %v1515_v14  ;;  %v1685_v17 = vpack.c.bf16 %v1681_v5, %v1680_v54  ;;  %v1677_v26 = vadd.f32 %v1518_v4, %v1494_v63  ;;  %v1676_v27 = vadd.f32 %v1517_v8, %v1493_v55 }
 0x218   : > { %v1684_v24 = vpack.c.bf16 %v1679_v20, %v1678_v22  ;;  %v1675_v34 = vadd.f32 %v1516_v13, %v1492_v58  ;;  %v1674_v35 = vadd.f32 %v1515_v14, %v1491_v59 }
 0x219   : > { %2642 = vmatpush3.bf16.msra.mxu1 %v1529_v2  ;;  %2654 = vmatpush3.bf16.msra.mxu0 %v1603_v3  ;;  %v1683_v28 = vpack.c.bf16 %v1677_v26, %v1676_v27 }
 0x21a   : > { %2643 = vmatprep.subr.bf16.mxu1 %v1528_v11  ;;  %2655 = vmatprep.subr.bf16.mxu0 %v1602_v12  ;;  %v1682_v37 = vpack.c.bf16 %v1675_v34, %v1674_v35 }
 0x21d   : > { %2644 = vmatpush3.bf16.msra.mxu1 %v1528_v11  ;;  %2656 = vmatpush3.bf16.msra.mxu0 %v1602_v12 }
 0x21e   : > { %2645 = vmatprep.subr.bf16.mxu1 %v1527_v15  ;;  %2657 = vmatprep.subr.bf16.mxu0 %v1601_v53 }
 0x221   : > { %2646 = vmatpush3.bf16.msra.mxu1 %v1527_v15  ;;  %2658 = vmatpush3.bf16.msra.mxu0 %v1601_v53  ;;  %v2971_v15 = vmov 0.0  }
 0x222   : > { %2663 = vmatprep.subr.bf16.mxu1 %v1685_v17  ;;  %2675 = vmatprep.subr.bf16.mxu0 %v2813_v16  ;;  %1065 = vst.msk [vmem:[%s3386_s24 + $0x10] sm:$0xff] %vm799_vm0, %v2971_v15  ;;  %1063 = vst.msk [vmem:[%s3386_s24] sm:$0xff] %vm799_vm0, %v2971_v15 }
 0x223   : > { %1064 = vst.msk [vmem:[%s3386_s24 + $0x8] sm:$0xff] %vm799_vm0, %v2971_v15  ;;  %1066 = vst.msk [vmem:[%s3386_s24 + $0x18] sm:$0xff] %vm799_vm0, %v2971_v15 }
 0x224   : > { %2648 = vmatmul.mubr.msk.bf16.vlgmr.msra.gmra.mxu1 %vm1541_vm2, %v2809_v18  ;;  %2660 = vmatmul.mubr.msk.bf16.vlgmr.msra.gmra.mxu0 %vm1541_vm2, %v2810_v19  ;;  %1067 = vst.msk [vmem:[%s3391_s25] sm:$0xff] %vm799_vm0, %v2971_v15  ;;  %1068 = vst.msk [vmem:[%s3391_s25 + $0x8] sm:$0xff] %vm799_vm0, %v2971_v15 }
 0x225   : > { %2664 = vmatpush3.bf16.msra.mxu1 %v1685_v17  ;;  %2671 = vmatprep.mubr.msk.bf16.mxu1 %vm1541_vm2, %v2811_v21  ;;  %1069 = vst.msk [vmem:[%s3391_s25 + $0x10] sm:$0xff] %vm799_vm0, %v2971_v15  ;;  %1070 = vst.msk [vmem:[%s3391_s25 + $0x18] sm:$0xff] %vm799_vm0, %v2971_v15 }
 0x226   : > { %2665 = vmatprep.subr.bf16.mxu1 %v1684_v24  ;;  %2676 = vmatpush3.bf16.msra.mxu0 %v2813_v16 }
 0x227   : > { %2677 = vmatprep.subr.bf16.mxu0 %v2814_v39 }
 0x229   : > { %2666 = vmatpush3.bf16.msra.mxu1 %v1684_v24  ;;  %v2036_v18 = vld [vmem:[%s3386_s24 + $0x10] sm:$0xff]  ;;  %v2034_v21 = vld [vmem:[%s3386_s24] sm:$0xff] }
 0x22a   : > { %2667 = vmatprep.subr.bf16.mxu1 %v1683_v28  ;;  %2678 = vmatpush3.bf16.msra.mxu0 %v2814_v39  ;;  %v2037_v35 = vld [vmem:[%s3386_s24 + $0x18] sm:$0xff] }
 0x22b   : > { %2679 = vmatprep.subr.bf16.mxu0 %v2815_v40 }
 0x22d   : > { %2668 = vmatpush3.bf16.msra.mxu1 %v1683_v28  ;;  %v2052_v28 = vld [vmem:[%s3391_s25 + $0x10] sm:$0xff] }
 0x22e   : > { %2669 = vmatprep.subr.bf16.mxu1 %v1682_v37  ;;  %2680 = vmatpush3.bf16.msra.mxu0 %v2815_v40 }
 0x22f   : > { %2681 = vmatprep.subr.bf16.mxu0 %v2816_v41 }
 0x231   : > { %2670 = vmatpush3.bf16.msra.mxu1 %v1682_v37 }
 0x232   : > { %2682 = vmatpush3.bf16.msra.mxu0 %v2816_v41  ;;  %2687 = vmatprep.subr.bf16.mxu1 %v2817_v44 }
 0x233   : > { %2699 = vmatprep.subr.bf16.mxu0 %v2818_v25 }
 0x234   : > { %2672 = vmatmul.mubr.msk.bf16.vlgmr.msra.gmra.mxu1 %vm1541_vm2, %v2812_v38 }
 0x235   : > { %2688 = vmatpush3.bf16.msra.mxu1 %v2817_v44  ;;  %v2050_v44 = vld [vmem:[%s3391_s25] sm:$0xff] }
 0x236   : > { %2689 = vmatprep.subr.bf16.mxu1 %v2819_v30 }
 0x239   : > { %2690 = vmatpush3.bf16.msra.mxu1 %v2819_v30  ;;  %v2035_v30 = vld [vmem:[%s3386_s24 + $0x8] sm:$0xff] }
 0x23a   : > { %2691 = vmatprep.subr.bf16.mxu1 %v2821_v31 }
 0x23d   : > { %2692 = vmatpush3.bf16.msra.mxu1 %v2821_v31 }
 0x23e   : > { %2693 = vmatprep.subr.bf16.mxu1 %v2823_v46 }
 0x241   : > { %2694 = vmatpush3.bf16.msra.mxu1 %v2823_v46 }
 0x2e4   : > { %v2649_v48 = vpop.f32.mrf.mxu1  ;;  %v2661_v36 = vpop.f32.mrf.mxu0 }
 0x2e5   : > { %v1753_v57 = vsub.f32 %v2649_v48, %v2661_v36 }
 0x2e6   : > { %v1582_v49 = vpop.f32.mrf.mxu1  ;;  %v1655_v50 = vpop.f32.mrf.mxu0 }
 0x2e7   : > { %v1751_v45 = vsub.f32 %v1582_v49, %v1655_v50 }
 0x2e8   : > { %v2650_v42 = vpop.f32.mrf.mxu1  ;;  %v2662_v32 = vpop.f32.mrf.mxu0 }
 0x2e9   : > { %v1754_v52 = vsub.f32 %v2650_v42, %v2662_v32 }
 0x2ea   : > { %v1585_v56 = vpop.f32.mrf.mxu1  ;;  %v1658_v33 = vpop.f32.mrf.mxu0 }
 0x2eb   : > { %v1752_v47 = vsub.f32 %v1585_v56, %v1658_v33  ;;  %v1764_v61 = vpack.c.bf16 %v1754_v52, %v1753_v57 }
 0x2ed   : > { %v1763_v60 = vpack.c.bf16 %v1752_v47, %v1751_v45 }
 0x2ef   : > { %2683 = vmatprep.mubr.msk.bf16.mxu0 %vm1541_vm2, %v1763_v60 }
 0x2f0   : > { %2684 = vmatmul.mubr.msk.bf16.vlgmr.msra.gmra.mxu0 %vm1541_vm2, %v1764_v61 }
 0x2f1   : > { %2700 = vmatpush3.bf16.msra.mxu0 %v2818_v25 }
 0x2f2   : > { %2701 = vmatprep.subr.bf16.mxu0 %v2820_v62 }
 0x2f4   : > { %v2673_v51 = vpop.f32.mrf.mxu1 }
 0x2f5   : > { %2702 = vmatpush3.bf16.msra.mxu0 %v2820_v62  ;;  %v1757_v2 = vsub.f32 %v2673_v51, %v2649_v48 }
 0x2f6   : > { %v1736_v63 = vpop.f32.mrf.mxu1  ;;  %2703 = vmatprep.subr.bf16.mxu0 %v2822_v43 }
 0x2f7   : > { %v1755_v1 = vsub.f32 %v1736_v63, %v1582_v49  ;;  %v1761_v7 = vsub.f32 %v1757_v2, %v2661_v36 }
 0x2f8   : > { %v2674_v3 = vpop.f32.mrf.mxu1 }
 0x2f9   : > { %v1758_v4 = vsub.f32 %v2674_v3, %v2650_v42  ;;  %2704 = vmatpush3.bf16.msra.mxu0 %v2822_v43  ;;  %v1759_v29 = vsub.f32 %v1755_v1, %v1655_v50  ;;  %v1943_v58 = vadd.f32 %v1761_v7, %v1753_v57 }
 0x2fa   : > { %v1739_v23 = vpop.f32.mrf.mxu1  ;;  %2705 = vmatprep.subr.bf16.mxu0 %v2824_v0 }
 0x2fb   : > { %v1762_v55 = vsub.f32 %v1758_v4, %v2662_v32  ;;  %v1756_v6 = vsub.f32 %v1739_v23, %v1585_v56  ;;  %v1941_v10 = vadd.f32 %v1759_v29, %v1751_v45  ;;  %v2053_v56 = vld [vmem:[%s3391_s25 + $0x18] sm:$0xff] }
 0x2fd   : > { %v1760_v8 = vsub.f32 %v1756_v6, %v1658_v33  ;;  %2706 = vmatpush3.bf16.msra.mxu0 %v2824_v0  ;;  %v1944_v9 = vadd.f32 %v1762_v55, %v1754_v52  ;;  %v1853_v13 = vpack.c.bf16 %v1762_v55, %v1761_v7 }
 0x2ff   : > { %v1852_v11 = vpack.c.bf16 %v1760_v8, %v1759_v29  ;;  %v1942_v12 = vadd.f32 %v1760_v8, %v1752_v47  ;;  %v1946_v14 = vpack.c.bf16 %v1944_v9, %v1943_v58  ;;  %v2051_v47 = vld [vmem:[%s3391_s25 + $0x8] sm:$0xff] }
 0x301   : > { %v1945_v59 = vpack.c.bf16 %v1942_v12, %v1941_v10  ;;  %2695 = vmatprep.mubr.msk.bf16.mxu1 %vm1541_vm2, %v1852_v11 }
 0x302   : > { %2696 = vmatmul.mubr.msk.bf16.vlgmr.msra.gmra.mxu1 %vm1541_vm2, %v1853_v13 }
 0x303   : > { %2707 = vmatprep.mubr.msk.bf16.mxu0 %vm1541_vm2, %v1945_v59 }
 0x304   : > { %2708 = vmatmul.mubr.msk.bf16.vlgmr.msra.gmra.mxu0 %vm1541_vm2, %v1946_v14 }
 0x3b0   : > { %v2685_v53 = vpop.f32.mrf.mxu0 }
 0x3b2   : > { %v1837_v5 = vpop.f32.mrf.mxu0 }
 0x3b4   : > { %v2686_v54 = vpop.f32.mrf.mxu0 }
 0x3b6   : > { %v1840_v16 = vpop.f32.mrf.mxu0 }
 0x3c2   : > { %v2697_v17 = vpop.f32.mrf.mxu1 }
 0x3c3   : > { %v2040_v19 = vsub.f32 %v2685_v53, %v2697_v17 }
 0x3c4   : > { %v1926_v20 = vpop.f32.mrf.mxu1  ;;  %v2709_v22 = vpop.f32.mrf.mxu0 }
 0x3c5   : > { %v2044_v24 = vadd.f32 %v2040_v19, %v2036_v18  ;;  %v2038_v26 = vsub.f32 %v1837_v5, %v1926_v20  ;;  %v2056_v27 = vsub.f32 %v2709_v22, %v2685_v53 }
 0x3c6   : > { %v2698_v34 = vpop.f32.mrf.mxu1  ;;  %v2019_v37 = vpop.f32.mrf.mxu0 }
 0x3c7   : > { %2048 = vst.msk [vmem:[%s3386_s24 + $0x10] sm:$0xff] %vm799_vm0, %v2044_v24  ;;  %v2042_v38 = vadd.f32 %v2038_v26, %v2034_v21  ;;  %v2060_v39 = vsub.f32 %v2056_v27, %v2697_v17  ;;  %v2041_v40 = vsub.f32 %v2686_v54, %v2698_v34  ;;  %v2054_v41 = vsub.f32 %v2019_v37, %v1837_v5 }
 0x3c8   : > { %v1929_v25 = vpop.f32.mrf.mxu1  ;;  %v2710_v31 = vpop.f32.mrf.mxu0 }
 0x3c9   : > { %2046 = vst.msk [vmem:[%s3386_s24] sm:$0xff] %vm799_vm0, %v2042_v38  ;;  %v2064_v46 = vadd.f32 %v2060_v39, %v2052_v28  ;;  %v2045_v48 = vadd.f32 %v2041_v40, %v2037_v35  ;;  %v2058_v36 = vsub.f32 %v2054_v41, %v1926_v20  ;;  %v2039_v49 = vsub.f32 %v1840_v16, %v1929_v25 }
 0x3ca   : > { %v2057_v50 = vsub.f32 %v2710_v31, %v2686_v54  ;;  %v2022_v42 = vpop.f32.mrf.mxu0 }
 0x3cb   : > { %2068 = vst.msk [vmem:[%s3391_s25 + $0x10] sm:$0xff] %vm799_vm0, %v2064_v46  ;;  %2049 = vst.msk [vmem:[%s3386_s24 + $0x18] sm:$0xff] %vm799_vm0, %v2045_v48  ;;  %v2062_v32 = vadd.f32 %v2058_v36, %v2050_v44  ;;  %v2043_v52 = vadd.f32 %v2039_v49, %v2035_v30  ;;  %v2055_v33 = vsub.f32 %v2022_v42, %v1840_v16 }
 0x3cc   : > { %v2061_v45 = vsub.f32 %v2057_v50, %v2698_v34 }
 0x3cd   : > { %2066 = vst.msk [vmem:[%s3391_s25] sm:$0xff] %vm799_vm0, %v2062_v32  ;;  %2047 = vst.msk [vmem:[%s3386_s24 + $0x8] sm:$0xff] %vm799_vm0, %v2043_v52  ;;  %v2059_v57 = vsub.f32 %v2055_v33, %v1929_v25 }
 0x3ce   : > { %v2065_v60 = vadd.f32 %v2061_v45, %v2053_v56  ;;  %v2075_v62 = vld [vmem:[%s3386_s24 + $0x10] sm:$0xff] }
 0x3cf   : > { %v2063_v61 = vadd.f32 %v2059_v57, %v2051_v47  ;;  %v2083_v63 = vmul.f32 %v2075_v62, %v2075_v62 }
 0x3d0   : > { %2069 = vst.msk [vmem:[%s3391_s25 + $0x18] sm:$0xff] %vm799_vm0, %v2065_v60  ;;  %v2073_v51 = vld [vmem:[%s3386_s24] sm:$0xff] }
 0x3d1   : > { %2067 = vst.msk [vmem:[%s3391_s25 + $0x8] sm:$0xff] %vm799_vm0, %v2063_v61  ;;  %v2081_v3 = vmul.f32 %v2073_v51, %v2073_v51 }
 0x3d2   : > { %v2079_v43 = vld [vmem:[%s3391_s25 + $0x10] sm:$0xff]  ;;  %v2076_v23 = vld [vmem:[%s3386_s24 + $0x18] sm:$0xff] }
 0x3d3   : > { %v2087_v0 = vmul.f32 %v2079_v43, %v2079_v43  ;;  %v2084_v8 = vmul.f32 %v2076_v23, %v2076_v23 }
 0x3d4   : > { %v2077_v1 = vld [vmem:[%s3391_s25] sm:$0xff]  ;;  %v2074_v29 = vld [vmem:[%s3386_s24 + $0x8] sm:$0xff] }
 0x3d5   : > { %v2091_v2 = vadd.f32 %v2087_v0, %v2083_v63  ;;  %v2085_v4 = vmul.f32 %v2077_v1, %v2077_v1  ;;  %v2082_v12 = vmul.f32 %v2074_v29, %v2074_v29 }
 0x3d7   : > { %v2099_v55 = vsel %vm799_vm0, %v2091_v2, -inf  ;;  %v2089_v6 = vadd.f32 %v2085_v4, %v2081_v3  ;;  %v2080_v7 = vld [vmem:[%s3391_s25 + $0x18] sm:$0xff] }
 0x3d8   : > { %2100 = vmax.xlane.f32.xlu1 %v2099_v55  ;;  %v2088_v9 = vmul.f32 %v2080_v7, %v2080_v7  ;;  %v2078_v10 = vld [vmem:[%s3391_s25 + $0x8] sm:$0xff] }
 0x3d9   : > { %v2093_v11 = vsel %vm799_vm0, %v2089_v6, -inf  ;;  %v2086_v58 = vmul.f32 %v2078_v10, %v2078_v10 }
 0x3da   : > { %2094 = vmax.xlane.f32.xlu0 %v2093_v11  ;;  %v2092_v13 = vadd.f32 %v2088_v9, %v2084_v8 }
 0x3db   : > { %v2090_v59 = vadd.f32 %v2086_v58, %v2082_v12 }
 0x3dc   : > { %v2102_v14 = vsel %vm799_vm0, %v2092_v13, -inf }
 0x3dd   : > { %2103 = vmax.xlane.f32.xlu1 %v2102_v14  ;;  %v2096_v15 = vsel %vm799_vm0, %v2090_v59, -inf }
 0x3de   : > { %2097 = vmax.xlane.f32.xlu0 %v2096_v15 }
 0x461   : > { %v2101_v53 = vpop.xlane.xlu1 %2100 }
 0x463   : > { %v2095_v5 = vpop.xlane.xlu0 %2094 }
 0x466   : > { %v2104_v54 = vpop.xlane.xlu1 %2103 }
 0x467   : > { %v2098_v16 = vpop.xlane.xlu0 %2097  ;;  %v2106_v17 = vmax.f32 %v2101_v53, %v2104_v54 }
 0x468   : > { %v2105_v18 = vmax.f32 %v2095_v5, %v2098_v16 }
 0x46a   : > { %v2107_v19 = vmax.f32 %v2105_v18, %v2106_v17 }
 0x46c   : > { %v2108_v20 = vrot.slane %v2107_v19, 4 }
 0x46e   : > { %v2109_v21 = vmax.f32 %v2107_v19, %v2108_v20 }
 0x470   : > { %v2110_v22 = vrot.slane %v2109_v21, 2 }
 0x472   : > { %v2111_v24 = vmax.f32 %v2109_v21, %v2110_v22 }
 0x474   : > { %v2112_v26 = vrot.slane %v2111_v24, 1 }
 0x476   : > { %v2113_v27 = vmax.f32 %v2111_v24, %v2112_v26 }
 0x478   : > { %2115 = vst.msk [vmem:[%s749_s19] sm:$0x1] %vm2114_vm3, %v2113_v27 }
 0x479 PF: > { %s30_s23 = sadd.s32 1, %s2963_s23   ;;  %s3486_s21 = sld [smem:[#allocation14_spill]] }
 0x47a   : > { %p27_p2 = scmp.ge.s32.totalorder %s30_s23, 4   ;;  %s3487_s22 = sld [smem:[#allocation15_spill]] }
 0x47c   :  { %29 = sbr.rel (!%p27_p2) target bundleno = 7 (0x7), region = 175 }
 0x481   :  { %2165 = vsyncpa [#allocation5], 1 }
 0x482   :  { %2167 = vsyncpa [#allocation5 + $0x1], 1 }
 0x483   :  { %2168 = vsyncpa [#allocation7], 1 }
 0x484   :  { %2169 = vsyncpa [#allocation10], 1 }

</bundles_post_ra>
